<compile_context>
chip_gen: v7x
topology: tpu7x:2x2x1
jax: 0.10.0
libtpu: 0.0.40
codegen_flags: <defaults>
</compile_context>

<pallas_src>
import jax
import jax.numpy as jnp
from jax.experimental import pallas as pl
from jax.experimental.pallas import tpu as pltpu


# ----------------------------- kernel helpers -----------------------------

def _conv3_rows(patch_ref, w_ref, n_rows):
    """sum_dy patch[dy:dy+n_rows] @ w[dy]; bf16 operands, f32 accumulation."""
    W = patch_ref.shape[1]
    K = patch_ref.shape[2]
    acc = None
    for dy in range(3):
        p = patch_ref[dy:dy + n_rows].reshape(n_rows * W, K)
        d = jnp.dot(p, w_ref[dy], preferred_element_type=jnp.float32)
        acc = d if acc is None else acc + d
    return acc                                          # (n_rows*W, C) float32


def _resnet_block_kernel(x_ref, w1_ref, b1_ref, w2_ref, b2_ref, out_ref,
                         pad_ref, patch_ref):
    H, W, C = x_ref.shape
    TH = out_ref.shape[0]            # output rows per grid step
    XR = pad_ref.shape[0]            # padded rows held per step (= YR + 2)
    YR = XR - 2                      # conv1-activation rows computed per step
    cdt = pad_ref.dtype              # bf16 compute dtype for MXU operands

    r0 = pl.multiple_of(pl.program_id(1) * TH, TH)      # first output row of tile
    # conv1 activation rows [y_start, y_start+YR) cover everything conv2 needs
    # for output rows [r0, r0+TH), including the 1-row reflection halo.
    y_start = jnp.minimum(jnp.maximum(r0 - 1, 0), H - YR)
    off = r0 - y_start

    # ---- reflection-padded input slab (XR, W+2, C), built entirely in VMEM ----
    pad_ref[1:YR + 1, 1:W + 1, :] = x_ref[pl.ds(y_start, YR)].astype(cdt)
    top = jnp.where(y_start == 0, 1, y_start - 1)            # reflect row -1 -> 1
    bot = jnp.where(y_start + YR == H, H - 2, y_start + YR)  # reflect row  H -> H-2
    pad_ref[0:1, 1:W + 1, :] = x_ref[pl.ds(top, 1)].astype(cdt)
    pad_ref[YR + 1:XR, 1:W + 1, :] = x_ref[pl.ds(bot, 1)].astype(cdt)
    pad_ref[:, 0:1, :] = pad_ref[:, 2:3, :]                  # reflect col -1 -> 1
    pad_ref[:, W + 1:W + 2, :] = pad_ref[:, W - 1:W, :]      # reflect col  W -> W-2

    # ---- conv1: dx-only im2col (3x) + 3 accumulated K=3C MXU matmuls ----
    for dx in range(3):
        patch_ref[:, :, dx * C:(dx + 1) * C] = pad_ref[:, dx:dx + W, :]
    y = _conv3_rows(patch_ref, w1_ref, YR) + b1_ref[0][None, :]
    y = jnp.maximum(y, 0.0)                                   # (YR*W, C) f32

    # ---- conv1 activation (bf16) overwrites the (already consumed) pad slab ----
    pad_ref[0:YR, 1:W + 1, :] = y.reshape(YR, W, C).astype(cdt)
    pad_ref[0:YR, 0:1, :] = pad_ref[0:YR, 2:3, :]
    pad_ref[0:YR, W + 1:W + 2, :] = pad_ref[0:YR, W - 1:W, :]

    # ---- conv2: assemble its TH+2 padded rows (row reflection at image edges) ----
    i_top = jnp.where(r0 == 0, 1, off - 1)                    # ypad row r0
    i_bot = jnp.where(r0 + TH == H, off + TH - 2, off + TH)   # ypad row r0+TH+1
    for dx in range(3):
        dst = slice(dx * C, (dx + 1) * C)
        patch_ref[1:TH + 1, :, dst] = pad_ref[pl.ds(off, TH), dx:dx + W, :]
        patch_ref[0:1, :, dst] = pad_ref[pl.ds(i_top, 1), dx:dx + W, :]
        patch_ref[TH + 1:TH + 2, :, dst] = pad_ref[pl.ds(i_bot, 1), dx:dx + W, :]

    z = _conv3_rows(patch_ref, w2_ref, TH) + b2_ref[0][None, :]
    z = z + x_ref[pl.ds(r0, TH)].astype(jnp.float32).reshape(TH * W, C)   # residual
    out_ref[...] = z.reshape(TH, W, C).astype(out_ref.dtype)


# ----------------------------- pallas wrappers -----------------------------

def _pick_row_tile(H):
    """Largest divisor of H not exceeding a small target row count."""
    target = max(1, min(16, H // 4))
    for d in range(target, 0, -1):
        if H % d == 0:
            return d
    return 1


def _resnet_block_nhwc(x, w1, b1, w2, b2):
    """x: (N,H,W,C); w*: (3, 3C, C) bf16; b*: (1, C) f32. Returns (N,H,W,C)."""
    N, H, W, C = x.shape
    TH = _pick_row_tile(H)
    YR = min(TH + 2, H)          # conv1-activation rows computed per tile
    XR = YR + 2                  # reflection-padded rows held per tile
    K = 3 * C

    itemsize = jnp.dtype(x.dtype).itemsize
    scratch_bytes = (XR * (W + 2) * C + XR * W * K) * 2                 # bf16 scratch
    io_bytes = 2 * (H * W * C + TH * W * C) * itemsize + 2 * (2 * 3 * K * C * 2 + 2 * C * 4)
    vmem_limit = int(min(100 * 2**20, max(32 * 2**20, 2 * (scratch_bytes + io_bytes))))

    flops = 2 * N * (2 * H * W * (9 * C) * C)                           # two 3x3 convs
    bytes_accessed = int(2 * N * H * W * C * itemsize + 2 * 3 * K * C * 2 + 2 * C * 4)

    return pl.pallas_call(
        _resnet_block_kernel,
        out_shape=jax.ShapeDtypeStruct((N, H, W, C), x.dtype),
        grid_spec=pltpu.PrefetchScalarGridSpec(
            num_scalar_prefetch=0,
            grid=(N, H // TH),
            in_specs=[
                pl.BlockSpec((None, H, W, C), lambda n, t: (n, 0, 0, 0)),
                pl.BlockSpec((3, K, C), lambda n, t: (0, 0, 0)),
                pl.BlockSpec((1, C), lambda n, t: (0, 0)),
                pl.BlockSpec((3, K, C), lambda n, t: (0, 0, 0)),
                pl.BlockSpec((1, C), lambda n, t: (0, 0)),
            ],
            out_specs=pl.BlockSpec((None, TH, W, C), lambda n, t: (n, t, 0, 0)),
            scratch_shapes=[
                pltpu.VMEM((XR, W + 2, C), jnp.bfloat16),   # padded slab (x, then act)
                pltpu.VMEM((XR, W, K), jnp.bfloat16),       # dx-only im2col patches
            ],
        ),
        compiler_params=pltpu.CompilerParams(
            dimension_semantics=("parallel", "parallel"),
            vmem_limit_bytes=vmem_limit),
        cost_estimate=pl.CostEstimate(flops=flops, transcendentals=0,
                                      bytes_accessed=bytes_accessed),
    )(x, w1, b1, w2, b2)


@jax.jit
def resnet_block(x_nchw, w1, b1, w2, b2):
    """ResnetBlock forward matching the PyTorch module.

    x_nchw : (N, C, H, W) float32
    w1, w2 : (3, 3, Cin, Cout)   (from PyTorch: weight.permute(2, 3, 1, 0))
    b1, b2 : (1, C)
    """
    # NCHW -> NHWC boundary glue (keep NHWC end-to-end in a real network).
    x = jnp.transpose(x_nchw, (0, 2, 3, 1))
    C = x.shape[-1]
    # (kh, kw, Cin, Cout) -> (3, 3*Cin, Cout) in bf16; row order (dx*C + ci)
    # matches the dx-only im2col layout used inside the kernel.
    w1_r = w1.reshape(3, 3 * C, C).astype(jnp.bfloat16)
    w2_r = w2.reshape(3, 3 * C, C).astype(jnp.bfloat16)
    out = _resnet_block_nhwc(x, w1_r, b1.astype(jnp.float32),
                             w2_r, b2.astype(jnp.float32))
    return jnp.transpose(out, (0, 3, 1, 2))


# ------------------------------ pure-JAX ref ------------------------------

def _reference(x_nchw, w1, b1, w2, b2):
    x = jnp.transpose(x_nchw, (0, 2, 3, 1))

    def conv(inp, w, b):
        p = jnp.pad(inp, ((0, 0), (1, 1), (1, 1), (0, 0)), mode='reflect')
        o = jax.lax.conv_general_dilated(
            p, w, window_strides=(1, 1), padding='VALID',
            dimension_numbers=('NHWC', 'HWIO', 'NHWC'))
        return o + b.reshape(1, 1, 1, -1)

    y = jnp.maximum(conv(x, w1, b1), 0.0)
    z = conv(y, w2, b2) + x
    return jnp.transpose(z, (0, 3, 1, 2))


if __name__ == "__main__":
    key = jax.random.PRNGKey(0)
    N, C, H, W = 2, 4, 16, 16

    k_x, k_w1, k_b1, k_w2, k_b2 = jax.random.split(key, 5)
    x = jax.random.normal(k_x, (N, C, H, W), dtype=jnp.float32)
    w1 = jax.random.normal(k_w1, (3, 3, C, C), dtype=jnp.float32) * 0.1
    b1 = jax.random.normal(k_b1, (1, C), dtype=jnp.float32) * 0.1
    w2 = jax.random.normal(k_w2, (3, 3, C, C), dtype=jnp.float32) * 0.1
    b2 = jax.random.normal(k_b2, (1, C), dtype=jnp.float32) * 0.1

    out = resnet_block(x, w1, b1, w2, b2)
    jax.block_until_ready(out)
    assert out.shape == (N, C, H, W), out.shape

    ref = _reference(x, w1, b1, w2, b2)
    err = float(jnp.max(jnp.abs(out - ref)))
    # Tolerance sized for bf16 MXU operands with f32 accumulation.
    assert err < 5e-2, f"max abs error vs reference too large: {err}"

    print("KERNEL_OK")
</pallas_src>

<mosaic_0001>
module attributes {stable_mosaic.version = 11 : i64} {
  func.func @_resnet_block_kernel(%arg0: i32, %arg1: i32, %arg2: memref<1x16x16x4xf32, #tpu.memory_space<vmem>>, %arg3: memref<3x12x4xbf16, #tpu.memory_space<vmem>>, %arg4: memref<1x4xf32, #tpu.memory_space<vmem>>, %arg5: memref<3x12x4xbf16, #tpu.memory_space<vmem>>, %arg6: memref<1x4xf32, #tpu.memory_space<vmem>>, %arg7: memref<1x4x16x4xf32, #tpu.memory_space<vmem>>, %arg8: memref<8x18x4xbf16, #tpu.memory_space<vmem>>, %arg9: memref<8x16x12xbf16, #tpu.memory_space<vmem>>) attributes {dimension_semantics = [#tpu.dimension_semantics<parallel>, #tpu.dimension_semantics<parallel>], iteration_bounds = array<i64: 2, 4>, scalar_prefetch = 0 : i64, scratch_operands = 2 : i64, tpu.core_type = #tpu.core_type<tc>, window_params = [{transform_indices = @transform_0, window_bounds = array<i64: 1, 16, 16, 4>}, {pipeline_mode = #tpu.pipeline_mode<synchronous>, transform_indices = @transform_1, window_bounds = array<i64: 3, 12, 4>}, {pipeline_mode = #tpu.pipeline_mode<synchronous>, transform_indices = @transform_2, window_bounds = array<i64: 1, 4>}, {pipeline_mode = #tpu.pipeline_mode<synchronous>, transform_indices = @transform_3, window_bounds = array<i64: 3, 12, 4>}, {pipeline_mode = #tpu.pipeline_mode<synchronous>, transform_indices = @transform_4, window_bounds = array<i64: 1, 4>}, {transform_indices = @transform_5, window_bounds = array<i64: 1, 4, 16, 4>}]} {
    %c4_i32 = arith.constant 4 : i32
    %0 = arith.muli %arg1, %c4_i32 : i32
    %1 = tpu.assume_multiple %0, 4 : i32
    %c1_i32 = arith.constant 1 : i32
    %2 = arith.subi %1, %c1_i32 : i32
    %c0_i32 = arith.constant 0 : i32
    %3 = arith.maxsi %2, %c0_i32 : i32
    %c10_i32 = arith.constant 10 : i32
    %4 = arith.minsi %3, %c10_i32 : i32
    %5 = arith.subi %1, %4 : i32
    %c0 = arith.constant 0 : index
    %6 = arith.index_cast %4 : i32 to index
    %c0_0 = arith.constant 0 : index
    %c0_1 = arith.constant 0 : index
    %7 = vector.load %arg2[%c0, %6, %c0_0, %c0_1] : memref<1x16x16x4xf32, #tpu.memory_space<vmem>>, vector<1x6x16x4xf32>
    %8 = vector.shape_cast %7 : vector<1x6x16x4xf32> to vector<6x16x4xf32>
    %9 = arith.truncf %8 : vector<6x16x4xf32> to vector<6x16x4xbf16>
    %c1 = arith.constant 1 : index
    %c1_2 = arith.constant 1 : index
    %c0_3 = arith.constant 0 : index
    %10 = vector.load %arg8[%c1, %c1_2, %c0_3] : memref<8x18x4xbf16, #tpu.memory_space<vmem>>, vector<6x16x4xbf16>
    tpu.vector_store %arg8[%c1, %c1_2, %c0_3], %9 {strides = array<i32>} : memref<8x18x4xbf16, #tpu.memory_space<vmem>>, vector<6x16x4xbf16>,
    %c0_i32_4 = arith.constant 0 : i32
    %11 = arith.cmpi eq, %4, %c0_i32_4 : i32
    %c1_i32_5 = arith.constant 1 : i32
    %12 = arith.subi %4, %c1_i32_5 : i32
    %c1_i32_6 = arith.constant 1 : i32
    %13 = arith.select %11, %c1_i32_6, %12 : i32
    %c6_i32 = arith.constant 6 : i32
    %14 = arith.addi %4, %c6_i32 : i32
    %c16_i32 = arith.constant 16 : i32
    %15 = arith.cmpi eq, %14, %c16_i32 : i32
    %c6_i32_7 = arith.constant 6 : i32
    %16 = arith.addi %4, %c6_i32_7 : i32
    %c14_i32 = arith.constant 14 : i32
    %17 = arith.select %15, %c14_i32, %16 : i32
    %c0_8 = arith.constant 0 : index
    %18 = arith.index_cast %13 : i32 to index
    %c0_9 = arith.constant 0 : index
    %c0_10 = arith.constant 0 : index
    %19 = vector.load %arg2[%c0_8, %18, %c0_9, %c0_10] : memref<1x16x16x4xf32, #tpu.memory_space<vmem>>, vector<1x1x16x4xf32>
    %20 = vector.shape_cast %19 : vector<1x1x16x4xf32> to vector<1x16x4xf32>
    %21 = arith.truncf %20 : vector<1x16x4xf32> to vector<1x16x4xbf16>
    %c0_11 = arith.constant 0 : index
    %c1_12 = arith.constant 1 : index
    %c0_13 = arith.constant 0 : index
    %22 = vector.load %arg8[%c0_11, %c1_12, %c0_13] : memref<8x18x4xbf16, #tpu.memory_space<vmem>>, vector<1x16x4xbf16>
    tpu.vector_store %arg8[%c0_11, %c1_12, %c0_13], %21 {strides = array<i32>} : memref<8x18x4xbf16, #tpu.memory_space<vmem>>, vector<1x16x4xbf16>,
    %c0_14 = arith.constant 0 : index
    %23 = arith.index_cast %17 : i32 to index
    %c0_15 = arith.constant 0 : index
    %c0_16 = arith.constant 0 : index
    %24 = vector.load %arg2[%c0_14, %23, %c0_15, %c0_16] : memref<1x16x16x4xf32, #tpu.memory_space<vmem>>, vector<1x1x16x4xf32>
    %25 = vector.shape_cast %24 : vector<1x1x16x4xf32> to vector<1x16x4xf32>
    %26 = arith.truncf %25 : vector<1x16x4xf32> to vector<1x16x4xbf16>
    %c7 = arith.constant 7 : index
    %c1_17 = arith.constant 1 : index
    %c0_18 = arith.constant 0 : index
    %27 = vector.load %arg8[%c7, %c1_17, %c0_18] : memref<8x18x4xbf16, #tpu.memory_space<vmem>>, vector<1x16x4xbf16>
    tpu.vector_store %arg8[%c7, %c1_17, %c0_18], %26 {strides = array<i32>} : memref<8x18x4xbf16, #tpu.memory_space<vmem>>, vector<1x16x4xbf16>,
    %c0_19 = arith.constant 0 : index
    %c2 = arith.constant 2 : index
    %c0_20 = arith.constant 0 : index
    %28 = vector.load %arg8[%c0_19, %c2, %c0_20] : memref<8x18x4xbf16, #tpu.memory_space<vmem>>, vector<8x1x4xbf16>
    %c0_21 = arith.constant 0 : index
    %c0_22 = arith.constant 0 : index
    %c0_23 = arith.constant 0 : index
    %29 = vector.load %arg8[%c0_21, %c0_22, %c0_23] : memref<8x18x4xbf16, #tpu.memory_space<vmem>>, vector<8x1x4xbf16>
    tpu.vector_store %arg8[%c0_21, %c0_22, %c0_23], %28 {strides = array<i32>} : memref<8x18x4xbf16, #tpu.memory_space<vmem>>, vector<8x1x4xbf16>,
    %c0_24 = arith.constant 0 : index
    %c15 = arith.constant 15 : index
    %c0_25 = arith.constant 0 : index
    %30 = vector.load %arg8[%c0_24, %c15, %c0_25] : memref<8x18x4xbf16, #tpu.memory_space<vmem>>, vector<8x1x4xbf16>
    %c0_26 = arith.constant 0 : index
    %c17 = arith.constant 17 : index
    %c0_27 = arith.constant 0 : index
    %31 = vector.load %arg8[%c0_26, %c17, %c0_27] : memref<8x18x4xbf16, #tpu.memory_space<vmem>>, vector<8x1x4xbf16>
    tpu.vector_store %arg8[%c0_26, %c17, %c0_27], %30 {strides = array<i32>} : memref<8x18x4xbf16, #tpu.memory_space<vmem>>, vector<8x1x4xbf16>,
    %c0_28 = arith.constant 0 : index
    %c0_29 = arith.constant 0 : index
    %c0_30 = arith.constant 0 : index
    %32 = vector.load %arg8[%c0_28, %c0_29, %c0_30] : memref<8x18x4xbf16, #tpu.memory_space<vmem>>, vector<8x16x4xbf16>
    %c0_31 = arith.constant 0 : index
    %c0_32 = arith.constant 0 : index
    %c0_33 = arith.constant 0 : index
    %33 = vector.load %arg9[%c0_31, %c0_32, %c0_33] : memref<8x16x12xbf16, #tpu.memory_space<vmem>>, vector<8x16x4xbf16>
    tpu.vector_store %arg9[%c0_31, %c0_32, %c0_33], %32 {strides = array<i32>} : memref<8x16x12xbf16, #tpu.memory_space<vmem>>, vector<8x16x4xbf16>,
    %c0_34 = arith.constant 0 : index
    %c1_35 = arith.constant 1 : index
    %c0_36 = arith.constant 0 : index
    %34 = vector.load %arg8[%c0_34, %c1_35, %c0_36] : memref<8x18x4xbf16, #tpu.memory_space<vmem>>, vector<8x16x4xbf16>
    %c0_37 = arith.constant 0 : index
    %c0_38 = arith.constant 0 : index
    %c4 = arith.constant 4 : index
    %35 = vector.load %arg9[%c0_37, %c0_38, %c4] : memref<8x16x12xbf16, #tpu.memory_space<vmem>>, vector<8x16x4xbf16>
    tpu.vector_store %arg9[%c0_37, %c0_38, %c4], %34 {strides = array<i32>} : memref<8x16x12xbf16, #tpu.memory_space<vmem>>, vector<8x16x4xbf16>,
    %c0_39 = arith.constant 0 : index
    %c2_40 = arith.constant 2 : index
    %c0_41 = arith.constant 0 : index
    %36 = vector.load %arg8[%c0_39, %c2_40, %c0_41] : memref<8x18x4xbf16, #tpu.memory_space<vmem>>, vector<8x16x4xbf16>
    %c0_42 = arith.constant 0 : index
    %c0_43 = arith.constant 0 : index
    %c8 = arith.constant 8 : index
    %37 = vector.load %arg9[%c0_42, %c0_43, %c8] : memref<8x16x12xbf16, #tpu.memory_space<vmem>>, vector<8x16x4xbf16>
    tpu.vector_store %arg9[%c0_42, %c0_43, %c8], %36 {strides = array<i32>} : memref<8x16x12xbf16, #tpu.memory_space<vmem>>, vector<8x16x4xbf16>,
    %c0_44 = arith.constant 0 : index
    %c0_45 = arith.constant 0 : index
    %c0_46 = arith.constant 0 : index
    %38 = vector.load %arg9[%c0_44, %c0_45, %c0_46] : memref<8x16x12xbf16, #tpu.memory_space<vmem>>, vector<6x16x12xbf16>
    %39 = vector.shape_cast %38 : vector<6x16x12xbf16> to vector<96x12xbf16>
    %c0_47 = arith.constant 0 : index
    %c0_48 = arith.constant 0 : index
    %c0_49 = arith.constant 0 : index
    %40 = vector.load %arg3[%c0_47, %c0_48, %c0_49] : memref<3x12x4xbf16, #tpu.memory_space<vmem>>, vector<1x12x4xbf16>
    %41 = vector.shape_cast %40 : vector<1x12x4xbf16> to vector<12x4xbf16>
    %cst = arith.constant dense<0.000000e+00> : vector<96x4xf32>
    %42 = tpu.matmul %39, %41, %cst {dimension_numbers = #tpu.dot_dimension_numbers<[1], [0], [0], [1], [0, 0, 1, 1], [], []>} : vector<96x12xbf16>, vector<12x4xbf16>, vector<96x4xf32> -> vector<96x4xf32>
    %c1_50 = arith.constant 1 : index
    %c0_51 = arith.constant 0 : index
    %c0_52 = arith.constant 0 : index
    %43 = vector.load %arg9[%c1_50, %c0_51, %c0_52] : memref<8x16x12xbf16, #tpu.memory_space<vmem>>, vector<6x16x12xbf16>
    %44 = vector.shape_cast %43 : vector<6x16x12xbf16> to vector<96x12xbf16>
    %c1_53 = arith.constant 1 : index
    %c0_54 = arith.constant 0 : index
    %c0_55 = arith.constant 0 : index
    %45 = vector.load %arg3[%c1_53, %c0_54, %c0_55] : memref<3x12x4xbf16, #tpu.memory_space<vmem>>, vector<1x12x4xbf16>
    %46 = vector.shape_cast %45 : vector<1x12x4xbf16> to vector<12x4xbf16>
    %cst_56 = arith.constant dense<0.000000e+00> : vector<96x4xf32>
    %47 = tpu.matmul %44, %46, %cst_56 {dimension_numbers = #tpu.dot_dimension_numbers<[1], [0], [0], [1], [0, 0, 1, 1], [], []>} : vector<96x12xbf16>, vector<12x4xbf16>, vector<96x4xf32> -> vector<96x4xf32>
    %48 = arith.addf %42, %47 : vector<96x4xf32>
    %c2_57 = arith.constant 2 : index
    %c0_58 = arith.constant 0 : index
    %c0_59 = arith.constant 0 : index
    %49 = vector.load %arg9[%c2_57, %c0_58, %c0_59] : memref<8x16x12xbf16, #tpu.memory_space<vmem>>, vector<6x16x12xbf16>
    %50 = vector.shape_cast %49 : vector<6x16x12xbf16> to vector<96x12xbf16>
    %c2_60 = arith.constant 2 : index
    %c0_61 = arith.constant 0 : index
    %c0_62 = arith.constant 0 : index
    %51 = vector.load %arg3[%c2_60, %c0_61, %c0_62] : memref<3x12x4xbf16, #tpu.memory_space<vmem>>, vector<1x12x4xbf16>
    %52 = vector.shape_cast %51 : vector<1x12x4xbf16> to vector<12x4xbf16>
    %cst_63 = arith.constant dense<0.000000e+00> : vector<96x4xf32>
    %53 = tpu.matmul %50, %52, %cst_63 {dimension_numbers = #tpu.dot_dimension_numbers<[1], [0], [0], [1], [0, 0, 1, 1], [], []>} : vector<96x12xbf16>, vector<12x4xbf16>, vector<96x4xf32> -> vector<96x4xf32>
    %54 = arith.addf %48, %53 : vector<96x4xf32>
    %c0_64 = arith.constant 0 : index
    %c0_65 = arith.constant 0 : index
    %55 = vector.load %arg4[%c0_64, %c0_65] : memref<1x4xf32, #tpu.memory_space<vmem>>, vector<1x4xf32>
    %56 = vector.shape_cast %55 : vector<1x4xf32> to vector<4xf32>
    %57 = vector.shape_cast %56 : vector<4xf32> to vector<1x4xf32>
    %58 = vector.broadcast %57 : vector<1x4xf32> to vector<96x4xf32>
    %59 = arith.addf %54, %58 : vector<96x4xf32>
    %cst_66 = arith.constant 0.000000e+00 : f32
    %60 = vector.broadcast %cst_66 : f32 to vector<96x4xf32>
    %61 = arith.maximumf %59, %60 : vector<96x4xf32>
    %62 = vector.shape_cast %61 : vector<96x4xf32> to vector<6x16x4xf32>
    %63 = arith.truncf %62 : vector<6x16x4xf32> to vector<6x16x4xbf16>
    %c0_67 = arith.constant 0 : index
    %c1_68 = arith.constant 1 : index
    %c0_69 = arith.constant 0 : index
    %64 = vector.load %arg8[%c0_67, %c1_68, %c0_69] : memref<8x18x4xbf16, #tpu.memory_space<vmem>>, vector<6x16x4xbf16>
    tpu.vector_store %arg8[%c0_67, %c1_68, %c0_69], %63 {strides = array<i32>} : memref<8x18x4xbf16, #tpu.memory_space<vmem>>, vector<6x16x4xbf16>,
    %c0_70 = arith.constant 0 : index
    %c2_71 = arith.constant 2 : index
    %c0_72 = arith.constant 0 : index
    %65 = vector.load %arg8[%c0_70, %c2_71, %c0_72] : memref<8x18x4xbf16, #tpu.memory_space<vmem>>, vector<6x1x4xbf16>
    %c0_73 = arith.constant 0 : index
    %c0_74 = arith.constant 0 : index
    %c0_75 = arith.constant 0 : index
    %66 = vector.load %arg8[%c0_73, %c0_74, %c0_75] : memref<8x18x4xbf16, #tpu.memory_space<vmem>>, vector<6x1x4xbf16>
    tpu.vector_store %arg8[%c0_73, %c0_74, %c0_75], %65 {strides = array<i32>} : memref<8x18x4xbf16, #tpu.memory_space<vmem>>, vector<6x1x4xbf16>,
    %c0_76 = arith.constant 0 : index
    %c15_77 = arith.constant 15 : index
    %c0_78 = arith.constant 0 : index
    %67 = vector.load %arg8[%c0_76, %c15_77, %c0_78] : memref<8x18x4xbf16, #tpu.memory_space<vmem>>, vector<6x1x4xbf16>
    %c0_79 = arith.constant 0 : index
    %c17_80 = arith.constant 17 : index
    %c0_81 = arith.constant 0 : index
    %68 = vector.load %arg8[%c0_79, %c17_80, %c0_81] : memref<8x18x4xbf16, #tpu.memory_space<vmem>>, vector<6x1x4xbf16>
    tpu.vector_store %arg8[%c0_79, %c17_80, %c0_81], %67 {strides = array<i32>} : memref<8x18x4xbf16, #tpu.memory_space<vmem>>, vector<6x1x4xbf16>,
    %c0_i32_82 = arith.constant 0 : i32
    %69 = arith.cmpi eq, %1, %c0_i32_82 : i32
    %c1_i32_83 = arith.constant 1 : i32
    %70 = arith.subi %5, %c1_i32_83 : i32
    %c1_i32_84 = arith.constant 1 : i32
    %71 = arith.select %69, %c1_i32_84, %70 : i32
    %c4_i32_85 = arith.constant 4 : i32
    %72 = arith.addi %1, %c4_i32_85 : i32
    %c16_i32_86 = arith.constant 16 : i32
    %73 = arith.cmpi eq, %72, %c16_i32_86 : i32
    %c4_i32_87 = arith.constant 4 : i32
    %74 = arith.addi %5, %c4_i32_87 : i32
    %c2_i32 = arith.constant 2 : i32
    %75 = arith.subi %74, %c2_i32 : i32
    %c4_i32_88 = arith.constant 4 : i32
    %76 = arith.addi %5, %c4_i32_88 : i32
    %77 = arith.select %73, %75, %76 : i32
    %78 = arith.index_cast %5 : i32 to index
    %c0_89 = arith.constant 0 : index
    %c0_90 = arith.constant 0 : index
    %79 = vector.load %arg8[%78, %c0_89, %c0_90] : memref<8x18x4xbf16, #tpu.memory_space<vmem>>, vector<4x16x4xbf16>
    %c1_91 = arith.constant 1 : index
    %c0_92 = arith.constant 0 : index
    %c0_93 = arith.constant 0 : index
    %80 = vector.load %arg9[%c1_91, %c0_92, %c0_93] : memref<8x16x12xbf16, #tpu.memory_space<vmem>>, vector<4x16x4xbf16>
    tpu.vector_store %arg9[%c1_91, %c0_92, %c0_93], %79 {strides = array<i32>} : memref<8x16x12xbf16, #tpu.memory_space<vmem>>, vector<4x16x4xbf16>,
    %81 = arith.index_cast %71 : i32 to index
    %c0_94 = arith.constant 0 : index
    %c0_95 = arith.constant 0 : index
    %82 = vector.load %arg8[%81, %c0_94, %c0_95] : memref<8x18x4xbf16, #tpu.memory_space<vmem>>, vector<1x16x4xbf16>
    %c0_96 = arith.constant 0 : index
    %c0_97 = arith.constant 0 : index
    %c0_98 = arith.constant 0 : index
    %83 = vector.load %arg9[%c0_96, %c0_97, %c0_98] : memref<8x16x12xbf16, #tpu.memory_space<vmem>>, vector<1x16x4xbf16>
    tpu.vector_store %arg9[%c0_96, %c0_97, %c0_98], %82 {strides = array<i32>} : memref<8x16x12xbf16, #tpu.memory_space<vmem>>, vector<1x16x4xbf16>,
    %84 = arith.index_cast %77 : i32 to index
    %c0_99 = arith.constant 0 : index
    %c0_100 = arith.constant 0 : index
    %85 = vector.load %arg8[%84, %c0_99, %c0_100] : memref<8x18x4xbf16, #tpu.memory_space<vmem>>, vector<1x16x4xbf16>
    %c5 = arith.constant 5 : index
    %c0_101 = arith.constant 0 : index
    %c0_102 = arith.constant 0 : index
    %86 = vector.load %arg9[%c5, %c0_101, %c0_102] : memref<8x16x12xbf16, #tpu.memory_space<vmem>>, vector<1x16x4xbf16>
    tpu.vector_store %arg9[%c5, %c0_101, %c0_102], %85 {strides = array<i32>} : memref<8x16x12xbf16, #tpu.memory_space<vmem>>, vector<1x16x4xbf16>,
    %87 = arith.index_cast %5 : i32 to index
    %c1_103 = arith.constant 1 : index
    %c0_104 = arith.constant 0 : index
    %88 = vector.load %arg8[%87, %c1_103, %c0_104] : memref<8x18x4xbf16, #tpu.memory_space<vmem>>, vector<4x16x4xbf16>
    %c1_105 = arith.constant 1 : index
    %c0_106 = arith.constant 0 : index
    %c4_107 = arith.constant 4 : index
    %89 = vector.load %arg9[%c1_105, %c0_106, %c4_107] : memref<8x16x12xbf16, #tpu.memory_space<vmem>>, vector<4x16x4xbf16>
    tpu.vector_store %arg9[%c1_105, %c0_106, %c4_107], %88 {strides = array<i32>} : memref<8x16x12xbf16, #tpu.memory_space<vmem>>, vector<4x16x4xbf16>,
    %90 = arith.index_cast %71 : i32 to index
    %c1_108 = arith.constant 1 : index
    %c0_109 = arith.constant 0 : index
    %91 = vector.load %arg8[%90, %c1_108, %c0_109] : memref<8x18x4xbf16, #tpu.memory_space<vmem>>, vector<1x16x4xbf16>
    %c0_110 = arith.constant 0 : index
    %c0_111 = arith.constant 0 : index
    %c4_112 = arith.constant 4 : index
    %92 = vector.load %arg9[%c0_110, %c0_111, %c4_112] : memref<8x16x12xbf16, #tpu.memory_space<vmem>>, vector<1x16x4xbf16>
    tpu.vector_store %arg9[%c0_110, %c0_111, %c4_112], %91 {strides = array<i32>} : memref<8x16x12xbf16, #tpu.memory_space<vmem>>, vector<1x16x4xbf16>,
    %93 = arith.index_cast %77 : i32 to index
    %c1_113 = arith.constant 1 : index
    %c0_114 = arith.constant 0 : index
    %94 = vector.load %arg8[%93, %c1_113, %c0_114] : memref<8x18x4xbf16, #tpu.memory_space<vmem>>, vector<1x16x4xbf16>
    %c5_115 = arith.constant 5 : index
    %c0_116 = arith.constant 0 : index
    %c4_117 = arith.constant 4 : index
    %95 = vector.load %arg9[%c5_115, %c0_116, %c4_117] : memref<8x16x12xbf16, #tpu.memory_space<vmem>>, vector<1x16x4xbf16>
    tpu.vector_store %arg9[%c5_115, %c0_116, %c4_117], %94 {strides = array<i32>} : memref<8x16x12xbf16, #tpu.memory_space<vmem>>, vector<1x16x4xbf16>,
    %96 = arith.index_cast %5 : i32 to index
    %c2_118 = arith.constant 2 : index
    %c0_119 = arith.constant 0 : index
    %97 = vector.load %arg8[%96, %c2_118, %c0_119] : memref<8x18x4xbf16, #tpu.memory_space<vmem>>, vector<4x16x4xbf16>
    %c1_120 = arith.constant 1 : index
    %c0_121 = arith.constant 0 : index
    %c8_122 = arith.constant 8 : index
    %98 = vector.load %arg9[%c1_120, %c0_121, %c8_122] : memref<8x16x12xbf16, #tpu.memory_space<vmem>>, vector<4x16x4xbf16>
    tpu.vector_store %arg9[%c1_120, %c0_121, %c8_122], %97 {strides = array<i32>} : memref<8x16x12xbf16, #tpu.memory_space<vmem>>, vector<4x16x4xbf16>,
    %99 = arith.index_cast %71 : i32 to index
    %c2_123 = arith.constant 2 : index
    %c0_124 = arith.constant 0 : index
    %100 = vector.load %arg8[%99, %c2_123, %c0_124] : memref<8x18x4xbf16, #tpu.memory_space<vmem>>, vector<1x16x4xbf16>
    %c0_125 = arith.constant 0 : index
    %c0_126 = arith.constant 0 : index
    %c8_127 = arith.constant 8 : index
    %101 = vector.load %arg9[%c0_125, %c0_126, %c8_127] : memref<8x16x12xbf16, #tpu.memory_space<vmem>>, vector<1x16x4xbf16>
    tpu.vector_store %arg9[%c0_125, %c0_126, %c8_127], %100 {strides = array<i32>} : memref<8x16x12xbf16, #tpu.memory_space<vmem>>, vector<1x16x4xbf16>,
    %102 = arith.index_cast %77 : i32 to index
    %c2_128 = arith.constant 2 : index
    %c0_129 = arith.constant 0 : index
    %103 = vector.load %arg8[%102, %c2_128, %c0_129] : memref<8x18x4xbf16, #tpu.memory_space<vmem>>, vector<1x16x4xbf16>
    %c5_130 = arith.constant 5 : index
    %c0_131 = arith.constant 0 : index
    %c8_132 = arith.constant 8 : index
    %104 = vector.load %arg9[%c5_130, %c0_131, %c8_132] : memref<8x16x12xbf16, #tpu.memory_space<vmem>>, vector<1x16x4xbf16>
    tpu.vector_store %arg9[%c5_130, %c0_131, %c8_132], %103 {strides = array<i32>} : memref<8x16x12xbf16, #tpu.memory_space<vmem>>, vector<1x16x4xbf16>,
    %c0_133 = arith.constant 0 : index
    %c0_134 = arith.constant 0 : index
    %c0_135 = arith.constant 0 : index
    %105 = vector.load %arg9[%c0_133, %c0_134, %c0_135] : memref<8x16x12xbf16, #tpu.memory_space<vmem>>, vector<4x16x12xbf16>
    %106 = vector.shape_cast %105 : vector<4x16x12xbf16> to vector<64x12xbf16>
    %c0_136 = arith.constant 0 : index
    %c0_137 = arith.constant 0 : index
    %c0_138 = arith.constant 0 : index
    %107 = vector.load %arg5[%c0_136, %c0_137, %c0_138] : memref<3x12x4xbf16, #tpu.memory_space<vmem>>, vector<1x12x4xbf16>
    %108 = vector.shape_cast %107 : vector<1x12x4xbf16> to vector<12x4xbf16>
    %cst_139 = arith.constant dense<0.000000e+00> : vector<64x4xf32>
    %109 = tpu.matmul %106, %108, %cst_139 {dimension_numbers = #tpu.dot_dimension_numbers<[1], [0], [0], [1], [0, 0, 1, 1], [], []>} : vector<64x12xbf16>, vector<12x4xbf16>, vector<64x4xf32> -> vector<64x4xf32>
    %c1_140 = arith.constant 1 : index
    %c0_141 = arith.constant 0 : index
    %c0_142 = arith.constant 0 : index
    %110 = vector.load %arg9[%c1_140, %c0_141, %c0_142] : memref<8x16x12xbf16, #tpu.memory_space<vmem>>, vector<4x16x12xbf16>
    %111 = vector.shape_cast %110 : vector<4x16x12xbf16> to vector<64x12xbf16>
    %c1_143 = arith.constant 1 : index
    %c0_144 = arith.constant 0 : index
    %c0_145 = arith.constant 0 : index
    %112 = vector.load %arg5[%c1_143, %c0_144, %c0_145] : memref<3x12x4xbf16, #tpu.memory_space<vmem>>, vector<1x12x4xbf16>
    %113 = vector.shape_cast %112 : vector<1x12x4xbf16> to vector<12x4xbf16>
    %cst_146 = arith.constant dense<0.000000e+00> : vector<64x4xf32>
    %114 = tpu.matmul %111, %113, %cst_146 {dimension_numbers = #tpu.dot_dimension_numbers<[1], [0], [0], [1], [0, 0, 1, 1], [], []>} : vector<64x12xbf16>, vector<12x4xbf16>, vector<64x4xf32> -> vector<64x4xf32>
    %115 = arith.addf %109, %114 : vector<64x4xf32>
    %c2_147 = arith.constant 2 : index
    %c0_148 = arith.constant 0 : index
    %c0_149 = arith.constant 0 : index
    %116 = vector.load %arg9[%c2_147, %c0_148, %c0_149] : memref<8x16x12xbf16, #tpu.memory_space<vmem>>, vector<4x16x12xbf16>
    %117 = vector.shape_cast %116 : vector<4x16x12xbf16> to vector<64x12xbf16>
    %c2_150 = arith.constant 2 : index
    %c0_151 = arith.constant 0 : index
    %c0_152 = arith.constant 0 : index
    %118 = vector.load %arg5[%c2_150, %c0_151, %c0_152] : memref<3x12x4xbf16, #tpu.memory_space<vmem>>, vector<1x12x4xbf16>
    %119 = vector.shape_cast %118 : vector<1x12x4xbf16> to vector<12x4xbf16>
    %cst_153 = arith.constant dense<0.000000e+00> : vector<64x4xf32>
    %120 = tpu.matmul %117, %119, %cst_153 {dimension_numbers = #tpu.dot_dimension_numbers<[1], [0], [0], [1], [0, 0, 1, 1], [], []>} : vector<64x12xbf16>, vector<12x4xbf16>, vector<64x4xf32> -> vector<64x4xf32>
    %121 = arith.addf %115, %120 : vector<64x4xf32>
    %c0_154 = arith.constant 0 : index
    %c0_155 = arith.constant 0 : index
    %122 = vector.load %arg6[%c0_154, %c0_155] : memref<1x4xf32, #tpu.memory_space<vmem>>, vector<1x4xf32>
    %123 = vector.shape_cast %122 : vector<1x4xf32> to vector<4xf32>
    %124 = vector.shape_cast %123 : vector<4xf32> to vector<1x4xf32>
    %125 = vector.broadcast %124 : vector<1x4xf32> to vector<64x4xf32>
    %126 = arith.addf %121, %125 : vector<64x4xf32>
    %c0_156 = arith.constant 0 : index
    %127 = arith.index_cast %1 : i32 to index
    %c0_157 = arith.constant 0 : index
    %c0_158 = arith.constant 0 : index
    %128 = vector.load %arg2[%c0_156, %127, %c0_157, %c0_158] : memref<1x16x16x4xf32, #tpu.memory_space<vmem>>, vector<1x4x16x4xf32>
    %129 = vector.shape_cast %128 : vector<1x4x16x4xf32> to vector<4x16x4xf32>
    %130 = vector.shape_cast %129 : vector<4x16x4xf32> to vector<64x4xf32>
    %131 = arith.addf %126, %130 : vector<64x4xf32>
    %132 = vector.shape_cast %131 : vector<64x4xf32> to vector<4x16x4xf32>
    %c0_159 = arith.constant 0 : index
    %c0_160 = arith.constant 0 : index
    %c0_161 = arith.constant 0 : index
    %c0_162 = arith.constant 0 : index
    %133 = vector.load %arg7[%c0_159, %c0_160, %c0_161, %c0_162] : memref<1x4x16x4xf32, #tpu.memory_space<vmem>>, vector<1x4x16x4xf32>
    %134 = vector.shape_cast %133 : vector<1x4x16x4xf32> to vector<4x16x4xf32>
    %135 = vector.shape_cast %132 : vector<4x16x4xf32> to vector<1x4x16x4xf32>
    tpu.vector_store %arg7[%c0_159, %c0_160, %c0_161, %c0_162], %135 {strides = array<i32>} : memref<1x4x16x4xf32, #tpu.memory_space<vmem>>, vector<1x4x16x4xf32>,
    return
  }
  func.func @transform_0(%arg0: i32, %arg1: i32) -> (i32, i32, i32, i32) {
    %c0_i32 = arith.constant 0 : i32
    %c0_i32_0 = arith.constant 0 : i32
    %c0_i32_1 = arith.constant 0 : i32
    %c0_i32_2 = arith.constant 0 : i32
    return %arg0, %c0_i32, %c0_i32_0, %c0_i32_1 : i32, i32, i32, i32
  }
  func.func @transform_1(%arg0: i32, %arg1: i32) -> (i32, i32, i32) {
    %c0_i32 = arith.constant 0 : i32
    %c0_i32_0 = arith.constant 0 : i32
    %c0_i32_1 = arith.constant 0 : i32
    %c0_i32_2 = arith.constant 0 : i32
    return %c0_i32, %c0_i32_0, %c0_i32_1 : i32, i32, i32
  }
  func.func @transform_2(%arg0: i32, %arg1: i32) -> (i32, i32) {
    %c0_i32 = arith.constant 0 : i32
    %c0_i32_0 = arith.constant 0 : i32
    %c0_i32_1 = arith.constant 0 : i32
    return %c0_i32, %c0_i32_0 : i32, i32
  }
  func.func @transform_3(%arg0: i32, %arg1: i32) -> (i32, i32, i32) {
    %c0_i32 = arith.constant 0 : i32
    %c0_i32_0 = arith.constant 0 : i32
    %c0_i32_1 = arith.constant 0 : i32
    %c0_i32_2 = arith.constant 0 : i32
    return %c0_i32, %c0_i32_0, %c0_i32_1 : i32, i32, i32
  }
  func.func @transform_4(%arg0: i32, %arg1: i32) -> (i32, i32) {
    %c0_i32 = arith.constant 0 : i32
    %c0_i32_0 = arith.constant 0 : i32
    %c0_i32_1 = arith.constant 0 : i32
    return %c0_i32, %c0_i32_0 : i32, i32
  }
  func.func @transform_5(%arg0: i32, %arg1: i32) -> (i32, i32, i32, i32) {
    %c0_i32 = arith.constant 0 : i32
    %c0_i32_0 = arith.constant 0 : i32
    %c0_i32_1 = arith.constant 0 : i32
    return %arg0, %arg1, %c0_i32, %c0_i32_0 : i32, i32, i32, i32
  }
}

</mosaic_0001>

<bundles_post_ra>
// kernel: resnet_block.1
= control target key start
LH: loop header
LB: loop body
LE: loop exit
PB: predicated region body
PF: predicated region fallthrough
CT: control target
= control target key end

     0   :  { %s3168_s18 = smov 0   ;;  %s3170_s19 = smov 0   ;;  %s3768_s0 = inlined_call_operand.vmem [shape: f32[2,16,16,4], index: 0, kind: input, shape index: {}]   ;;  %s3769_s1 = inlined_call_operand.vmem [shape: bf16[3,12,4], index: 1, kind: input, shape index: {}]   ;;  %s3770_s2 = inlined_call_operand.vmem [shape: f32[1,4], index: 2, kind: input, shape index: {}]   ;;  %s3771_s3 = inlined_call_operand.vmem [shape: bf16[3,12,4], index: 3, kind: input, shape index: {}]   ;;  %s3772_s4 = inlined_call_operand.vmem [shape: f32[1,4], index: 4, kind: input, shape index: {}]   ;;  %s3773_s5 = inlined_call_operand.vmem [shape: f32[2,16,16,4], index: 5, kind: output, shape index: {}]  }
   0x1   :  { %s3172_s20 = smov 0   ;;  %s3174_s21 = smov 0  }
   0x2   :  { %s3176_s22 = smov 0  }
   0x3 LB: > { %s24_s23 = sadd.s32 1, %s3126_s20  ;;  %s27_s24 = sadd.s32 1, %s3130_s21  ;;  %s3134_s22 = sphi %s3176_s22, %s15_s22   ;;  %s3130_s21 = sphi %s3174_s21, %s3786_s21   ;;  %s3126_s20 = sphi %s3172_s20, %s3785_s20   ;;  %s3122_s19 = sphi %s3170_s19, %s3784_s19   ;;  %s3118_s18 = sphi %s3168_s18, %s3783_s18  }
   0x4   : > { %p25_p0 = scmp.ge.s32.totalorder %s24_s23, 4  ;;  %p2589_p1 = scmp.ge.s32.totalorder %s3134_s22, 1 }
   0x5   : > { %p201_p2 = scmp.lt.s32.totalorder %s3134_s22, 9 }
   0x6   : > { %s3788_s23 = smov (%p25_p0, %s24_s23), 0  ;;  %s3790_s24 = smov (!%p25_p0, %s27_s24), %s3130_s21 }
   0x7   : > { %p202_p3 = pnand %p2589_p1, %p201_p2  ;;  %p29_p4 = scmp.ge.s32.totalorder %s3790_s24, 2 }
   0x8   : > { %p234_p5 = scmp.lt.s32.totalorder (!%p202_p3), %s3122_s19, 1  ;;  %s3201_s25 = sshll.u32 (!%p202_p3), %s3118_s18, 2  ;;  %vm308_vm0 = vsmask.f32 (!%p202_p3), 256  ;;  %vm309_vm1 = vsmask.f32 (!%p202_p3), 4368 }
   0x9   : > { %s3792_s24 = smov (%p29_p4, %s3790_s24), 0  ;;  %205 = sbr.rel (%p202_p3) target bundleno = 891 (0x37b), region = 40 }
   0xa   : > { %s2597_s26 = sadd.s32 (!%p202_p3), 4294967295, %s3201_s25  ;;  %vm432_vm2 = vcmask (!%p202_p3), 27648   ;;  %vm433_vm3 = vsmask.f32 (!%p202_p3), 7938  ;;  %vm440_vm4 = vcmask (!%p202_p3), 24576   ;;  %vm3226_vm5 = vmor (!%p202_p3), %vm308_vm0, %vm309_vm1  ;;  %vm1069_vm9 = vcmask (!%p202_p3), 1046528  }
   0xb   : > { %p253_p6 = scmp.gt.s32.totalorder (!%p202_p3), %s2597_s26, 0  ;;  %p2598_p7 = scmp.lt.s32.totalorder (!%p202_p3), %s2597_s26, 10  ;;  %v435_v17 = vld [vmem:[#allocation2 + $0xc] sm:$0xf] (!%p202_p3)  ;;  %v442_v18 = vld [vmem:[#allocation2 + $0x14] sm:$0x1] (!%p202_p3)  ;;  %vm3233_vm6 = vmand (!%p202_p3), %vm432_vm2, %vm433_vm3 }
   0xc   : > { %vm3240_vm7 = vmand (!%p202_p3), %vm440_vm4, %vm308_vm0  ;;  %v445_v31 = vld [vmem:[#allocation2 + $0x18] sm:$0xf] (!%p202_p3)  ;;  %v449_v38 = vld [vmem:[#allocation2 + $0x20] sm:$0x1] (!%p202_p3)  ;;  %vm851_vm10 = vsmask.f32 (!%p202_p3), 7424 }
   0xd   : > { %v452_v44 = vld [vmem:[#allocation2 + $0x24] sm:$0xf] (!%p202_p3)  ;;  %v456_v50 = vld [vmem:[#allocation2 + $0x2c] sm:$0x1] (!%p202_p3)  ;;  %vm3279_vm8 = vmand (!%p202_p3), %vm440_vm4, %vm433_vm3  ;;  %vm754_vm11 = vcmask (!%p202_p3), 31744   ;;  %s3136_s13 = smov (!%p202_p3), 8  }
   0xe   : > { %s3137_s14 = smov (!%p202_p3), 4   ;;  %vm1169_vm12 = vcmask (!%p202_p3), 1045504   ;;  %vm972_vm13 = vcmask (!%p202_p3), 64544   ;;  %vm1118_vm14 = vcmask (!%p202_p3), 97344   ;;  %vm1150_vm15 = vcmask (!%p202_p3), 97280   ;;  %p1815_p10 = scmp.eq.s32.totalorder (!%p202_p3), %s3201_s25, 0 }
   0xf   : > { %p242_p12 = scmp.lt.s32.totalorder (!%p202_p3), %s3201_s25, 15 }
  0x10   : > { %s3794_s19 = smov (!%p234_p5, %s3122_s19), 1  ;;  %s3796_s26 = smov (!%p253_p6, %s2597_s26), 0 }
  0x11   : > { %s2786_s27 = sshll.u32 %s3794_s19, 8  ;;  %s3798_s26 = smov (!%p2598_p7, %s3796_s26), 10 }
  0x12   : > { %s3210_s30 = scalar_lea.vmem %s3768_s0, %s2786_s27  ;;  %s2603_s6 = sshll.u32 %s3798_s26, 4 }
  0x13   : > { %s3216_s7 = scalar_lea.vmem %s3210_s30, %s2603_s6  ;;  %p480_p8 = scmp.eq.s32.totalorder %s3798_s26, 0 }
  0x14   : > { %v260_v0 = vld [vmem:[%s3216_s7] sm:$0xff]  ;;  %v261_v1 = vld [vmem:[%s3216_s7 + $0x8] sm:$0xff]  ;;  %v262_v2 = vld [vmem:[%s3216_s7 + $0x10] sm:$0xff]  ;;  %s2616_s8 = sadd.s32 4294967295, %s3798_s26  ;;  %s483_s11 = sadd.s32 6, %s3798_s26 }
  0x15   : > { %v2789_v3 = vpack.c.bf16 %v260_v0, %v260_v0  ;;  %v2790_v4 = vpack.c.bf16 %v261_v1, %v261_v1  ;;  %v263_v5 = vld [vmem:[%s3216_s7 + $0x18] sm:$0xff]  ;;  %v2791_v6 = vpack.c.bf16 %v262_v2, %v262_v2  ;;  %v264_v7 = vld [vmem:[%s3216_s7 + $0x20] sm:$0xff]  ;;  %v265_v8 = vld [vmem:[%s3216_s7 + $0x28] sm:$0xff]  ;;  %s3800_s8 = smov (%p480_p8, %s2616_s8), 1  ;;  %p3311_p9 = scmp.eq.s32.totalorder %s483_s11, 16 }
  0x16   : > { %v2792_v9 = vpack.c.bf16 %v263_v5, %v263_v5  ;;  %v2793_v10 = vpack.c.bf16 %v264_v7, %v264_v7  ;;  %v2794_v11 = vpack.c.bf16 %v265_v8, %v265_v8  ;;  %v266_v39 = vld [vmem:[%s3216_s7 + $0x30] sm:$0xff]  ;;  %v267_v45 = vld [vmem:[%s3216_s7 + $0x38] sm:$0xff]  ;;  %s2617_s9 = sshll.u32 %s3800_s8, 4  ;;  %v268_v7 = vld [vmem:[%s3216_s7 + $0x40] sm:$0xff]  ;;  %s257_s12 = ssub.s32 %s3201_s25, %s3798_s26 }
  0x17   : > { %v312_v12 = vshrl.u32 %v2789_v3, 16  ;;  %v315_v13 = vshll.u32 %v2789_v3, 16  ;;  %v320_v14 = vshrl.u32 %v2790_v4, 16  ;;  %v323_v15 = vshll.u32 %v2790_v4, 16  ;;  %s487_s10 = scalar_lea.vmem %s3210_s30, %s2617_s9  ;;  %s3802_s11 = smov (%p3311_p9, %s483_s11), 14 }
  0x18   : > { %v329_v19 = vshrl.u32 %v2791_v6, 16  ;;  %v332_v20 = vshll.u32 %v2791_v6, 16  ;;  %v337_v21 = vshrl.u32 %v2792_v9, 16  ;;  %v340_v22 = vshll.u32 %v2792_v9, 16  ;;  %v488_v59 = vld [vmem:[%s487_s10] sm:$0xff]  ;;  %v489_v60 = vld [vmem:[%s487_s10 + $0x8] sm:$0xff] }
  0x19   : > { %v314_v23 = vrot.slane %v312_v12, 7  ;;  %v322_v24 = vrot.slane %v320_v14, 7  ;;  %v346_v26 = vshrl.u32 %v2793_v10, 16  ;;  %v349_v27 = vshll.u32 %v2793_v10, 16  ;;  %s2620_s15 = sshll.u32 %s3802_s11, 4  ;;  %s1820_s26 = sadd.s32 2, %s257_s12 }
  0x1a   : > { %v331_v29 = vrot.slane %v329_v19, 7  ;;  %v339_v30 = vrot.slane %v337_v21, 7  ;;  %v354_v32 = vshrl.u32 %v2794_v11, 16  ;;  %v357_v33 = vshll.u32 %v2794_v11, 16  ;;  %v459_v11 = vld [vmem:[#allocation2 + $0x30] sm:$0xf]  ;;  %s524_s16 = scalar_lea.vmem %s3210_s30, %s2620_s15 }
  0x1b   : > { %v317_v34 = vor.u32 %v315_v13, %v314_v23  ;;  %v318_v35 = vrot.slane %v314_v23, 4  ;;  %v325_v36 = vor.u32 %v323_v15, %v322_v24  ;;  %v327_v37 = vrot.slane %v322_v24, 4  ;;  %s1818_s15 = sadd.s32 4, %s3201_s25  ;;  %s1821_s17 = sadd.s32 4, %s257_s12 }
  0x1c   : > { %v334_v40 = vor.u32 %v332_v20, %v331_v29  ;;  %v335_v41 = vrot.slane %v331_v29, 4  ;;  %v342_v42 = vor.u32 %v340_v22, %v339_v30  ;;  %v344_v43 = vrot.slane %v339_v30, 4  ;;  %v269_v29 = vld [vmem:[%s3216_s7 + $0x48] sm:$0xff]  ;;  %p1819_p11 = scmp.eq.s32.totalorder %s1818_s15, 16  ;;  %s2817_s27 = smul.u32 12, %s257_s12 }
  0x1d   : > { %v326_v46 = vsel %vm3226_vm5, %v318_v35, %v325_v36  ;;  %v436_v47 = vsel %vm3233_vm6, %v317_v34, %v435_v17  ;;  %v443_v48 = vsel %vm3240_vm7, %v327_v37, %v442_v18  ;;  %v348_v49 = vrot.slane %v346_v26, 7  ;;  %v516_v35 = vld [vmem:[#allocation2] sm:$0xf]  ;;  %s3808_s25 = smov (!%p242_p12, %s3201_s25), 15  ;;  %s2820_s15 = sshll.u32 %s3118_s18, 6 }
  0x1e   : > { %437 = vst [vmem:[#allocation2 + $0xc] sm:$0xf] %v436_v47  ;;  %439 = vst.msk [vmem:[#allocation2 + $0x10] sm:$0xf] %vm432_vm2, %v326_v46  ;;  %v343_v51 = vsel %vm3226_vm5, %v335_v41, %v342_v42  ;;  %v446_v52 = vsel %vm3233_vm6, %v334_v40, %v445_v31  ;;  %v450_v53 = vsel %vm3240_vm7, %v344_v43, %v449_v38  ;;  %v356_v54 = vrot.slane %v354_v32, 7  ;;  %s3806_s26 = smov (!%p1819_p11, %s1820_s26), %s1821_s17  ;;  %s3610_s6 = scalar_lea.vmem [#allocation2], %s2817_s27 }
  0x1f   : > { %444 = vst [vmem:[#allocation2 + $0x14] sm:$0x1] %v443_v48  ;;  %447 = vst [vmem:[#allocation2 + $0x18] sm:$0xf] %v446_v52  ;;  %v351_v55 = vor.u32 %v349_v27, %v348_v49  ;;  %v352_v56 = vrot.slane %v348_v49, 4  ;;  %v2795_v57 = vpack.c.bf16 %v266_v39, %v266_v39  ;;  %v3263_v58 = vpack.c.bf16 %v267_v45, %v267_v45  ;;  %s2819_s29 = smul.u32 12, %s3806_s26  ;;  %s3719_s26 = scalar_lea.vmem %s3210_s30, %s2820_s15 }
  0x20   : > { %448 = vst.msk [vmem:[#allocation2 + $0x1c] sm:$0xf] %vm432_vm2, %v343_v51  ;;  %451 = vst [vmem:[#allocation2 + $0x20] sm:$0x1] %v450_v53  ;;  %v359_v61 = vor.u32 %v357_v33, %v356_v54  ;;  %v361_v62 = vrot.slane %v356_v54, 4  ;;  %v2801_v63 = vpack.c.bf16 %v488_v59, %v488_v59  ;;  %v3265_v0 = vpack.c.bf16 %v489_v60, %v489_v60  ;;  %s2593_s11 = sshll.u32 %s3808_s25, 1 }
  0x21   : > { %v453_v1 = vsel %vm3233_vm6, %v351_v55, %v452_v44  ;;  %v363_v2 = vshrl.u32 %v2795_v57, 16  ;;  %v366_v5 = vshll.u32 %v2795_v57, 16  ;;  %v371_v6 = vshrl.u32 %v3263_v58, 16  ;;  %v520_v47 = vld [vmem:[#allocation2 + $0x8] sm:$0x1]  ;;  %s3645_s8 = scalar_lea.vmem [#allocation2], %s2819_s29 }
  0x22   : > { %v360_v3 = vsel %vm3226_vm5, %v352_v56, %v359_v61  ;;  %454 = vst [vmem:[#allocation2 + $0x24] sm:$0xf] %v453_v1  ;;  %v457_v4 = vsel %vm3240_vm7, %v361_v62, %v456_v50  ;;  %v497_v8 = vshrl.u32 %v2801_v63, 16  ;;  %v500_v9 = vshll.u32 %v2801_v63, 16  ;;  %v463_v54 = vld [vmem:[#allocation2 + $0x38] sm:$0x1] }
  0x23   : > { %v505_v10 = vshrl.u32 %v3265_v0, 16  ;;  %455 = vst.msk [vmem:[#allocation2 + $0x28] sm:$0xf] %vm432_vm2, %v360_v3  ;;  %458 = vst [vmem:[#allocation2 + $0x2c] sm:$0x1] %v457_v4  ;;  %v508_v13 = vshll.u32 %v3265_v0, 16  ;;  %v3290_v21 = vpack.c.bf16 %v268_v7, %v268_v7  ;;  %v2798_v55 = vpack.c.bf16 %v269_v29, %v269_v29 }
  0x24   : > { %v3284_v14 = vrot.slane %v363_v2, 7  ;;  %v3286_v15 = vrot.slane %v371_v6, 7  ;;  %v374_v17 = vshll.u32 %v3263_v58, 16  ;;  %v499_v40 = vrot.slane %v497_v8, 7  ;;  %v466_v4 = vld [vmem:[#allocation2 + $0x3c] sm:$0xf] }
  0x25   : > { %v562_v18 = vld [vmem:[#allocation2 + $0xc] sm:$0x2]  ;;  %v604_v19 = vld [vmem:[#allocation2 + $0xc] sm:$0x1]  ;;  %v626_v20 = vld [vmem:[#allocation2 + $0x10] sm:$0x8] }
  0x26   : > { %v2624_v22 = vrot.slane %v562_v18, 9  ;;  %v2632_v23 = vrot.slane %v626_v20, 11  ;;  %v669_v24 = vld [vmem:[#allocation2 + $0x14] sm:$0x1]  ;;  %v368_v26 = vor.u32 %v366_v5, %v3284_v14  ;;  %v3293_v27 = vld [vmem:[#allocation2 + $0xc] sm:$0xfe]   ;;  %v502_v45 = vor.u32 %v500_v9, %v499_v40 }
  0x27   : > { %v563_v32 = vld [vmem:[#allocation2 + $0x18] sm:$0x2]  ;;  %v607_v33 = vld [vmem:[#allocation2 + $0x18] sm:$0x1]  ;;  %v627_v34 = vld [vmem:[#allocation2 + $0x1c] sm:$0x8]  ;;  %v376_v53 = vor.u32 %v374_v17, %v3286_v15 }
  0x28   : > { %v605_v30 = vsel %vm3240_vm7, %v2624_v22, %v604_v19  ;;  %v670_v31 = vsel %vm3279_vm8, %v2632_v23, %v669_v24  ;;  %v460_v36 = vsel %vm3233_vm6, %v368_v26, %v459_v11  ;;  %v2625_v37 = vrot.slane %v563_v32, 9  ;;  %v672_v39 = vld [vmem:[#allocation2 + $0x20] sm:$0x1]  ;;  %v3307_v44 = vld [vmem:[#allocation2 + $0x18] sm:$0xfe]  }
  0x29   : > { %606 = vst [vmem:[#allocation2 + $0xc] sm:$0x1] %v605_v30  ;;  %671 = vst [vmem:[#allocation2 + $0x14] sm:$0x1] %v670_v31  ;;  %v2633_v38 = vrot.slane %v627_v34, 11  ;;  %v380_v41 = vshrl.u32 %v3290_v21, 16  ;;  %v517_v57 = vsel %vm3233_vm6, %v502_v45, %v516_v35 }
  0x2a   : > { %461 = vst [vmem:[#allocation2 + $0x30] sm:$0xf] %v460_v36  ;;  %v608_v42 = vsel %vm3240_vm7, %v2625_v37, %v607_v33  ;;  %v503_v46 = vrot.slane %v499_v40, 4  ;;  %v564_v48 = vld [vmem:[#allocation2 + $0x24] sm:$0x2]  ;;  %v507_v49 = vrot.slane %v505_v10, 7 }
  0x2b   : > { %v673_v43 = vsel %vm3279_vm8, %v2633_v38, %v672_v39  ;;  %609 = vst [vmem:[#allocation2 + $0x18] sm:$0x1] %v608_v42  ;;  %v2626_v50 = vrot.slane %v564_v48, 9  ;;  %v610_v51 = vld [vmem:[#allocation2 + $0x24] sm:$0x1]  ;;  %v1073_v56 = vrot.slane %v3293_v27, 1 }
  0x2c   : > { %674 = vst [vmem:[#allocation2 + $0x20] sm:$0x1] %v673_v43  ;;  %v628_v52 = vld [vmem:[#allocation2 + $0x28] sm:$0x8]  ;;  %v675_v59 = vld [vmem:[#allocation2 + $0x2c] sm:$0x1]  ;;  %v510_v60 = vor.u32 %v508_v13, %v507_v49 }
  0x2d   : > { %v2634_v58 = vrot.slane %v628_v52, 11  ;;  %v512_v61 = vrot.slane %v507_v49, 4  ;;  %518 = vst [vmem:[#allocation2] sm:$0xf] %v517_v57  ;;  %v611_v62 = vsel %vm3240_vm7, %v2626_v50, %v610_v51  ;;  %v369_v63 = vrot.slane %v3284_v14, 4  ;;  %v270_v57 = vld [vmem:[%s3216_s7 + $0x50] sm:$0xff] }
  0x2e   : > { %612 = vst [vmem:[#allocation2 + $0x24] sm:$0x1] %v611_v62  ;;  %v378_v1 = vrot.slane %v3286_v15, 4  ;;  %v382_v2 = vrot.slane %v380_v41, 7  ;;  %v383_v3 = vshll.u32 %v3290_v21, 16  ;;  %v511_v6 = vsel %vm3226_vm5, %v503_v46, %v510_v60 }
  0x2f   : > { %v676_v0 = vsel %vm3279_vm8, %v2634_v58, %v675_v59  ;;  %v521_v7 = vsel %vm3240_vm7, %v512_v61, %v520_v47  ;;  %v377_v8 = vsel %vm3226_vm5, %v369_v63, %v376_v53  ;;  %v388_v9 = vshrl.u32 %v2798_v55, 16  ;;  %519 = vst.msk [vmem:[#allocation2 + $0x4] sm:$0xf] %vm432_vm2, %v511_v6  ;;  %v470_v60 = vld [vmem:[#allocation2 + $0x44] sm:$0x1] }
  0x30   : > { %v3020_v5 = vld [vmem:[#allocation2 + $0xc] sm:$0xff]   ;;  %677 = vst [vmem:[#allocation2 + $0x2c] sm:$0x1] %v676_v0  ;;  %v3021_v10 = vld [vmem:[#allocation2 + $0x14] ss:$0 sps:$4 sm:$0x11]   ;;  %v464_v13 = vsel %vm3240_vm7, %v378_v1, %v463_v54  ;;  %v385_v14 = vor.u32 %v383_v3, %v382_v2 }
  0x31   : > { %v1076_v11 = vrot.slane %v3307_v44, 1  ;;  %522 = vst [vmem:[#allocation2 + $0x8] sm:$0x1] %v521_v7  ;;  %462 = vst.msk [vmem:[#allocation2 + $0x34] sm:$0xf] %vm432_vm2, %v377_v8  ;;  %v865_v15 = vshrl.u32 %v3020_v5, 16 }
  0x32   : > { %v867_v17 = vshll.u32 %v3020_v5, 16  ;;  %v3023_v18 = vld [vmem:[#allocation2 + $0x14] ss:$0 sps:$4 sm:$0x11]   ;;  %465 = vst [vmem:[#allocation2 + $0x38] sm:$0x1] %v464_v13  ;;  %v467_v22 = vsel %vm3233_vm6, %v385_v14, %v466_v4  ;;  %v2799_v4 = vpack.c.bf16 %v270_v57, %v270_v57 }
  0x33   : > { %v386_v19 = vrot.slane %v382_v2, 4  ;;  %v872_v20 = vshll.u32 %v3021_v10, 16  ;;  %v3024_v21 = vld [vmem:[#allocation2 + $0x18] sm:$0xff]   ;;  %v1074_v24 = vrot.slane %v3023_v18, 1  ;;  %v3345_v27 = vrot.slane %v388_v9, 7  ;;  %v3052_v58 = vld [vmem:[#allocation2 + $0xc] sm:$0xff]  }
  0x34   : > { %v869_v23 = vrot.slane %v867_v17, 1  ;;  %v3025_v26 = vld [vmem:[#allocation2 + $0x20] ss:$0 sps:$4 sm:$0x11]   ;;  %468 = vst [vmem:[#allocation2 + $0x3c] sm:$0xf] %v467_v22 }
  0x35   : > { %v874_v29 = vrot.slane %v872_v20, 1  ;;  %v877_v30 = vshrl.u32 %v3024_v21, 16  ;;  %v879_v31 = vshll.u32 %v3024_v21, 16  ;;  %v391_v32 = vshll.u32 %v2798_v55, 16  ;;  %v561_v37 = vld [vmem:[#allocation2] sm:$0x2] }
  0x36   : > { %v870_v33 = vor.u32 %v869_v23, %v865_v15  ;;  %v1075_v34 = vsel %vm1069_vm9, %v1073_v56, %v1074_v24  ;;  %v884_v35 = vshll.u32 %v3025_v26, 16  ;;  %v3027_v36 = vld [vmem:[#allocation2 + $0x20] ss:$0 sps:$4 sm:$0x11]   ;;  %v2623_v39 = vrot.slane %v561_v37, 9  ;;  %v3354_v50 = vld [vmem:[#allocation2 + $0x24] sm:$0xff]  }
  0x37   : > { %1096 = vrot.lane.b32.xlu1 %v1075_v34, %s3136_s13  ;;  %v881_v38 = vrot.slane %v879_v31, 1  ;;  %v601_v40 = vld [vmem:[#allocation2] sm:$0x1]  ;;  %v393_v41 = vor.u32 %v391_v32, %v3345_v27  ;;  %v1077_v44 = vrot.slane %v3027_v36, 1  ;;  %v625_v45 = vld [vmem:[#allocation2 + $0x4] sm:$0x8] }
  0x38   : > { %v875_v42 = vsel %vm851_vm10, %v870_v33, %v874_v29  ;;  %v886_v43 = vrot.slane %v884_v35, 1  ;;  %v666_v46 = vld [vmem:[#allocation2 + $0x8] sm:$0x1]  ;;  %v602_v48 = vsel %vm3240_vm7, %v2623_v39, %v601_v40  ;;  %v2631_v49 = vrot.slane %v625_v45, 11  ;;  %v3359_v53 = vld [vmem:[#allocation2] sm:$0xfe]  }
  0x39   : > { %950 = vrot.lane.b32.xlu0 %v875_v42, %s3137_s14  ;;  %v882_v47 = vor.u32 %v881_v38, %v877_v30  ;;  %v394_v51 = vsel %vm3226_vm5, %v386_v19, %v393_v41  ;;  %v1078_v52 = vsel %vm1069_vm9, %v1076_v11, %v1077_v44  ;;  %603 = vst [vmem:[#allocation2] sm:$0x1] %v602_v48  ;;  %v891_v56 = vshll.u32 %v3354_v50, 16  ;;  %v3033_v59 = vld [vmem:[#allocation2 + $0x2c] ss:$0 sps:$4 sm:$0x11]  }
  0x3a   : > { %469 = vst.msk [vmem:[#allocation2 + $0x40] sm:$0xf] %vm432_vm2, %v394_v51  ;;  %v667_v55 = vsel %vm3279_vm8, %v2631_v49, %v666_v46  ;;  %v889_v61 = vshrl.u32 %v3354_v50, 16  ;;  %v565_v62 = vld [vmem:[#allocation2 + $0x30] sm:$0x2]  ;;  %v1070_v0 = vrot.slane %v3359_v53, 1 }
  0x3b   : > { %v887_v54 = vsel %vm851_vm10, %v882_v47, %v886_v43  ;;  %1098 = vrot.lane.b32.xlu1 %v1078_v52, %s3136_s13  ;;  %668 = vst [vmem:[#allocation2 + $0x8] sm:$0x1] %v667_v55  ;;  %v613_v63 = vld [vmem:[#allocation2 + $0x30] sm:$0x1]  ;;  %756 = vst.msk [vmem:[#allocation3 + $0x8] sm:$0xff] %vm754_vm11, %v3052_v58  ;;  %v2627_v1 = vrot.slane %v565_v62, 9 }
  0x3c   : > { %v629_v2 = vld [vmem:[#allocation2 + $0x34] sm:$0x8]  ;;  %v678_v3 = vld [vmem:[#allocation2 + $0x38] sm:$0x1]  ;;  %v893_v5 = vrot.slane %v891_v56, 1  ;;  %v395_v9 = vrot.slane %v3345_v27, 4 }
  0x3d   : > { %952 = vrot.lane.b32.xlu0 %v887_v54, %s3137_s14  ;;  %v3034_v6 = vld [vmem:[#allocation2 + $0x24] sm:$0xfe]   ;;  %v3035_v7 = vld [vmem:[#allocation2 + $0x2c] ss:$0 sps:$4 sm:$0x11]   ;;  %v2635_v8 = vrot.slane %v629_v2, 11  ;;  %v614_v13 = vsel %vm3240_vm7, %v2627_v1, %v613_v63 }
  0x3e   : > { %v271_v10 = vld [vmem:[%s3216_s7 + $0x58] sm:$0xff]  ;;  %615 = vst [vmem:[#allocation2 + $0x30] sm:$0x1] %v614_v13  ;;  %v471_v19 = vsel %vm3240_vm7, %v395_v9, %v470_v60  ;;  %v896_v22 = vshll.u32 %v3033_v59, 16  ;;  %v397_v23 = vshrl.u32 %v2799_v4, 16  ;;  %v525_v24 = vld [vmem:[%s524_s16] sm:$0xff]  ;;  %v894_v44 = vor.u32 %v893_v5, %v889_v61 }
  0x3f   : > { %v3053_v11 = vld [vmem:[#allocation2 + $0x18] sm:$0xff]   ;;  %v679_v18 = vsel %vm3279_vm8, %v2635_v8, %v678_v3  ;;  %472 = vst [vmem:[#allocation2 + $0x44] sm:$0x1] %v471_v19  ;;  %v2800_v32 = vpack.c.bf16 %v271_v10, %v271_v10  ;;  %v526_v33 = vld [vmem:[%s524_s16 + $0x8] sm:$0xff]  ;;  %v1079_v35 = vrot.slane %v3034_v6, 1  ;;  %v1080_v36 = vrot.slane %v3035_v7, 1 }
  0x40   : > { %v566_v14 = vld [vmem:[#allocation2 + $0x3c] sm:$0x2]  ;;  %v616_v15 = vld [vmem:[#allocation2 + $0x3c] sm:$0x1]  ;;  %v3028_v17 = vld [vmem:[#allocation2] sm:$0xff]   ;;  %757 = vst.msk [vmem:[#allocation3 + $0x10] sm:$0xff] %vm754_vm11, %v3053_v11  ;;  %v2803_v47 = vpack.c.bf16 %v525_v24, %v525_v24  ;;  %v2804_v57 = vpack.c.bf16 %v526_v33, %v526_v33 }
  0x41   : > { %v2628_v20 = vrot.slane %v566_v14, 9  ;;  %v630_v21 = vld [vmem:[#allocation2 + $0x40] sm:$0x8]  ;;  %680 = vst [vmem:[#allocation2 + $0x38] sm:$0x1] %v679_v18  ;;  %v853_v27 = vshrl.u32 %v3028_v17, 16  ;;  %v1081_v59 = vsel %vm1069_vm9, %v1079_v35, %v1080_v36 }
  0x42   : > { %v3029_v26 = vld [vmem:[#allocation2 + $0x8] ss:$0 sps:$4 sm:$0x11]   ;;  %v855_v30 = vshll.u32 %v3028_v17, 16  ;;  %v399_v37 = vrot.slane %v397_v23, 7  ;;  %v898_v40 = vrot.slane %v896_v22, 1 }
  0x43   : > { %v617_v29 = vsel %vm3240_vm7, %v2628_v20, %v616_v15  ;;  %v3031_v31 = vld [vmem:[#allocation2 + $0x8] ss:$0 sps:$4 sm:$0x11]   ;;  %v860_v34 = vshll.u32 %v3029_v26, 16  ;;  %v2636_v41 = vrot.slane %v630_v21, 11  ;;  %v400_v46 = vshll.u32 %v2799_v4, 16 }
  0x44   : > { %618 = vst [vmem:[#allocation2 + $0x3c] sm:$0x1] %v617_v29  ;;  %v857_v38 = vrot.slane %v855_v30, 1  ;;  %v1071_v39 = vrot.slane %v3031_v31, 1  ;;  %v473_v42 = vld [vmem:[#allocation2 + $0x48] sm:$0xf]  ;;  %v899_v6 = vsel %vm851_vm10, %v894_v44, %v898_v40 }
  0x45   : > { %v862_v43 = vrot.slane %v860_v34, 1  ;;  %v3385_v45 = vld [vmem:[#allocation2 + $0x30] sm:$0xfe]   ;;  %v403_v51 = vrot.slane %v399_v37, 4  ;;  %v405_v52 = vshrl.u32 %v2800_v32, 16  ;;  %v3056_v53 = vld [vmem:[#allocation2] sm:$0xff]   ;;  %v402_v55 = vor.u32 %v400_v46, %v399_v37 }
  0x46   : > { %v858_v48 = vor.u32 %v857_v38, %v853_v27  ;;  %v1072_v49 = vsel %vm1069_vm9, %v1070_v0, %v1071_v39  ;;  %v3036_v50 = vld [vmem:[#allocation2 + $0x30] sm:$0xff]   ;;  %v408_v56 = vshll.u32 %v2800_v32, 16  ;;  %v681_v62 = vld [vmem:[#allocation2 + $0x44] sm:$0x1]  ;;  %755 = vst.msk [vmem:[#allocation3] sm:$0xff] %vm754_vm11, %v3056_v53  ;;  %v534_v9 = vshrl.u32 %v2803_v47, 16 }
  0x47   : > { %1094 = vrot.lane.b32.xlu1 %v1072_v49, %s3136_s13  ;;  %v901_v60 = vshrl.u32 %v3036_v50, 16  ;;  %v903_v61 = vshll.u32 %v3036_v50, 16  ;;  %v682_v0 = vsel %vm3279_vm8, %v2636_v41, %v681_v62  ;;  %v407_v2 = vrot.slane %v405_v52, 7  ;;  %v477_v4 = vld [vmem:[#allocation2 + $0x50] sm:$0x1]  ;;  %v3057_v5 = vld [vmem:[#allocation2 + $0x24] sm:$0xff]  }
  0x48   : > { %v3037_v54 = vld [vmem:[#allocation2 + $0x38] ss:$0 sps:$4 sm:$0x11]   ;;  %v863_v58 = vsel %vm851_vm10, %v858_v48, %v862_v43  ;;  %v474_v3 = vsel %vm3233_vm6, %v402_v55, %v473_v42  ;;  %683 = vst [vmem:[#allocation2 + $0x44] sm:$0x1] %v682_v0  ;;  %v537_v10 = vshll.u32 %v2803_v47, 16 }
  0x49   : > { %948 = vrot.lane.b32.xlu0 %v863_v58, %s3137_s14  ;;  %v908_v63 = vshll.u32 %v3037_v54, 16  ;;  %v905_v7 = vrot.slane %v903_v61, 1  ;;  %v3041_v8 = vld [vmem:[#allocation2 + $0x38] ss:$0 sps:$4 sm:$0x11]   ;;  %v1082_v14 = vrot.slane %v3385_v45, 1  ;;  %v410_v15 = vor.u32 %v408_v56, %v407_v2 }
  0x4a   : > { %475 = vst [vmem:[#allocation2 + $0x48] sm:$0xf] %v474_v3  ;;  %v554_v17 = vld [vmem:[#allocation2 + $0x54] sm:$0xf]  ;;  %758 = vst.msk [vmem:[#allocation3 + $0x18] sm:$0xff] %vm754_vm11, %v3057_v5  ;;  %v412_v21 = vrot.slane %v407_v2, 4 }
  0x4b   : > { %v3038_v1 = vld [vmem:[#allocation2 + $0x3c] sm:$0xff]   ;;  %1100 = vrot.lane.b32.xlu1 %v1081_v59, %s3136_s13  ;;  %v910_v11 = vrot.slane %v908_v63, 1  ;;  %v3058_v18 = vld [vmem:[#allocation2 + $0x30] sm:$0xff]   ;;  %v906_v19 = vor.u32 %v905_v7, %v901_v60  ;;  %v536_v22 = vrot.slane %v534_v9, 7  ;;  %v1083_v24 = vrot.slane %v3041_v8, 1  ;;  %s2729_s16 = sadd.s32 4294967295, %s257_s12 }
  0x4c   : > { %v915_v13 = vshll.u32 %v3038_v1, 16  ;;  %v913_v20 = vshrl.u32 %v3038_v1, 16  ;;  %v3060_v23 = vld [vmem:[#allocation2 + $0x3c] sm:$0xff]   ;;  %v411_v26 = vsel %vm3226_vm5, %v403_v51, %v410_v15  ;;  %v542_v27 = vshrl.u32 %v2804_v57, 16  ;;  %759 = vst.msk [vmem:[#allocation3 + $0x20] sm:$0xff] %vm754_vm11, %v3058_v18  ;;  %s3804_s16 = smov (%p1815_p10, %s2729_s16), 1 }
  0x4d   : > { %954 = vrot.lane.b32.xlu0 %v899_v6, %s3137_s14  ;;  %v545_v29 = vshll.u32 %v2804_v57, 16  ;;  %v911_v30 = vsel %vm851_vm10, %v906_v19, %v910_v11  ;;  %v3042_v32 = vld [vmem:[#allocation2 + $0x3c] sm:$0xfe]   ;;  %476 = vst.msk [vmem:[#allocation2 + $0x4c] sm:$0xf] %vm432_vm2, %v411_v26  ;;  %v478_v33 = vsel %vm3240_vm7, %v412_v21, %v477_v4  ;;  %v539_v34 = vor.u32 %v537_v10, %v536_v22  ;;  %s2818_s28 = smul.u32 12, %s3804_s16 }
  0x4e   : > { %v917_v31 = vrot.slane %v915_v13, 1  ;;  %v558_v35 = vld [vmem:[#allocation2 + $0x5c] sm:$0x1]  ;;  %v3054_v36 = vld [vmem:[%s3769_s1 + $0x8] sm:$0x3f]   ;;  %760 = vst.msk [vmem:[#allocation3 + $0x28] sm:$0xff] %vm754_vm11, %v3060_v23  ;;  %v1084_v44 = vsel %vm1069_vm9, %v1082_v14, %v1083_v24 }
  0x4f   : > { %479 = vst [vmem:[#allocation2 + $0x50] sm:$0x1] %v478_v33  ;;  %v540_v37 = vrot.slane %v536_v22, 4  ;;  %v544_v38 = vrot.slane %v542_v27, 7  ;;  %v3416_v39 = vld [vmem:[%s3769_s1] sm:$0x3f]   ;;  %v555_v40 = vsel %vm3233_vm6, %v539_v34, %v554_v17  ;;  %2971 = vmatprep.subr.msk.bf16.mxu0 %vm1169_vm12, %v3054_v36  ;;  %2972 = vmatprep.subr.msk.bf16.mxu1 %vm1169_vm12, %v3054_v36 }
  0x50   : > { %v3039_v41 = vld [vmem:[#allocation2 + $0x44] ss:$0 sps:$4 sm:$0x11]   ;;  %556 = vst [vmem:[#allocation2 + $0x54] sm:$0xf] %v555_v40  ;;  %v1171_v46 = vsel %vm1169_vm12, %v3054_v36, 0  ;;  %v918_v47 = vor.u32 %v917_v31, %v913_v20 }
  0x51   : > { %956 = vrot.lane.b32.xlu0 %v911_v30, %s3137_s14  ;;  %v547_v42 = vor.u32 %v545_v29, %v544_v38  ;;  %v549_v43 = vrot.slane %v544_v38, 4  ;;  %v3043_v45 = vld [vmem:[#allocation2 + $0x44] ss:$0 sps:$4 sm:$0x11]   ;;  %v920_v48 = vshll.u32 %v3039_v41, 16  ;;  %2858 = vmatpush3.bf16.msra.mxu0 %v1171_v46  ;;  %v1085_v53 = vrot.slane %v3042_v32, 1 }
  0x52   : > { %v567_v49 = vld [vmem:[#allocation2 + $0x48] sm:$0x2]  ;;  %v619_v50 = vld [vmem:[#allocation2 + $0x48] sm:$0x1]  ;;  %2930 = vmatpush3.bf16.msra.mxu1 %v1171_v46  ;;  %2973 = vmatprep.subr.msk.bf16.mxu0 %vm1169_vm12, %v3416_v39  ;;  %v1086_v56 = vrot.slane %v3043_v45, 1  ;;  %s3629_s7 = scalar_lea.vmem [#allocation2], %s2818_s28 }
  0x53   : > { %v548_v51 = vsel %vm3226_vm5, %v540_v37, %v547_v42  ;;  %v559_v52 = vsel %vm3240_vm7, %v549_v43, %v558_v35  ;;  %v2629_v54 = vrot.slane %v567_v49, 9  ;;  %v922_v55 = vrot.slane %v920_v48, 1  ;;  %v3059_v49 = vld [vmem:[%s3769_s1 + $0x10] sm:$0x3f]   ;;  %s2594_s12 = sshll.u32 %s3794_s19, 5 }
  0x54   : > { %557 = vst.msk [vmem:[#allocation2 + $0x58] sm:$0xf] %vm432_vm2, %v548_v51  ;;  %560 = vst [vmem:[#allocation2 + $0x5c] sm:$0x1] %v559_v52  ;;  %v631_v57 = vld [vmem:[#allocation2 + $0x4c] sm:$0x8]  ;;  %v1087_v1 = vsel %vm1069_vm9, %v1085_v53, %v1086_v56  ;;  %s246_s16 = sadd.s32 %s2594_s12, %s2593_s11 }
  0x55   : > { %1102 = vrot.lane.b32.xlu0 %v1084_v44, %s3136_s13  ;;  %v620_v58 = vsel %vm3240_vm7, %v2629_v54, %v619_v50  ;;  %v2637_v59 = vrot.slane %v631_v57, 11  ;;  %v923_v61 = vsel %vm851_vm10, %v918_v47, %v922_v55  ;;  %v3048_v9 = vld [vmem:[#allocation2 + $0x48] sm:$0xfe]   ;;  %v1278_v48 = vsel %vm1169_vm12, %v3416_v39, 0  ;;  %s2595_s28 = sshll.u32 %s246_s16, 3 }
  0x56   : > { %v684_v60 = vld [vmem:[#allocation2 + $0x50] sm:$0x1]  ;;  %621 = vst [vmem:[#allocation2 + $0x48] sm:$0x1] %v620_v58  ;;  %958 = vrot.lane.b32.xlu1 %v923_v61, %s3137_s14  ;;  %v1088_v22 = vrot.slane %v3048_v9, 1  ;;  %v1395_v56 = vsel %vm1169_vm12, %v3059_v49, 0  ;;  %s3729_s18 = scalar_lea.vmem %s3773_s5, %s2595_s28 }
  0x57   : > { %v685_v62 = vsel %vm3279_vm8, %v2637_v59, %v684_v60  ;;  %v568_v63 = vld [vmem:[#allocation2 + $0x54] sm:$0x2]  ;;  %v622_v0 = vld [vmem:[#allocation2 + $0x54] sm:$0x1] }
  0x58   : > { %686 = vst [vmem:[#allocation2 + $0x50] sm:$0x1] %v685_v62  ;;  %v2630_v2 = vrot.slane %v568_v63, 9 }
  0x5a   : > { %v623_v3 = vsel %vm3240_vm7, %v2630_v2, %v622_v0  ;;  %1104 = vrot.lane.b32.xlu1 %v1087_v1, %s3136_s13 }
  0x5b   : > { %v632_v4 = vld [vmem:[#allocation2 + $0x58] sm:$0x8]  ;;  %v687_v5 = vld [vmem:[#allocation2 + $0x5c] sm:$0x1]  ;;  %624 = vst [vmem:[#allocation2 + $0x54] sm:$0x1] %v623_v3 }
  0x5c   : > { %v2638_v6 = vrot.slane %v632_v4, 11  ;;  %v3050_v29 = vld [vmem:[#allocation2 + $0x54] sm:$0xfe]  }
  0x5d   : > { %v3044_v7 = vld [vmem:[#allocation2 + $0x48] sm:$0xff]   ;;  %v1091_v38 = vrot.slane %v3050_v29, 1 }
  0x5e   : > { %v688_v8 = vsel %vm3279_vm8, %v2638_v6, %v687_v5  ;;  %v3061_v10 = vld [vmem:[#allocation2 + $0x48] sm:$0xff]   ;;  %v925_v13 = vshrl.u32 %v3044_v7, 16  ;;  %v927_v14 = vshll.u32 %v3044_v7, 16 }
  0x5f   : > { %689 = vst [vmem:[#allocation2 + $0x5c] sm:$0x1] %v688_v8  ;;  %v3045_v11 = vld [vmem:[#allocation2 + $0x50] ss:$0 sps:$4 sm:$0x11]   ;;  %761 = vst.msk [vmem:[#allocation3 + $0x30] sm:$0xff] %vm754_vm11, %v3061_v10 }
  0x60   : > { %v3049_v15 = vld [vmem:[#allocation2 + $0x50] ss:$0 sps:$4 sm:$0x11]   ;;  %v932_v17 = vshll.u32 %v3045_v11, 16  ;;  %v929_v18 = vrot.slane %v927_v14, 1 }
  0x61   : > { %v1089_v27 = vrot.slane %v3049_v15, 1  ;;  %v3087_v5 = vld [vmem:[%s3771_s3 + $0x8] sm:$0x3f]   ;;  %v3508_v11 = vld [vmem:[%s3770_s2] ss:$0 sm:$0xff] }
  0x62   : > { %v3046_v19 = vld [vmem:[#allocation2 + $0x54] sm:$0xff]   ;;  %v934_v21 = vrot.slane %v932_v17, 1  ;;  %v930_v23 = vor.u32 %v929_v18, %v925_v13  ;;  %2975 = vmatprep.subr.msk.bf16.mxu1 %vm1169_vm12, %v3087_v5  ;;  %v2188_v6 = vsel %vm1169_vm12, %v3087_v5, 0 }
  0x63   : > { %v3062_v20 = vld [vmem:[#allocation2 + $0x54] sm:$0xff]   ;;  %v937_v24 = vshrl.u32 %v3046_v19, 16  ;;  %v939_v26 = vshll.u32 %v3046_v19, 16  ;;  %v1090_v36 = vsel %vm1069_vm9, %v1088_v22, %v1089_v27 }
  0x64   : > { %762 = vst.msk [vmem:[#allocation3 + $0x38] sm:$0xff] %vm754_vm11, %v3062_v20  ;;  %v935_v31 = vsel %vm851_vm10, %v930_v23, %v934_v21 }
  0x65   : > { %v941_v32 = vrot.slane %v939_v26, 1  ;;  %960 = vrot.lane.b32.xlu0 %v935_v31, %s3137_s14 }
  0x66   : > { %v3047_v30 = vld [vmem:[#allocation2 + $0x5c] ss:$0 sps:$4 sm:$0x11]  }
  0x67   : > { %v3051_v33 = vld [vmem:[#allocation2 + $0x5c] ss:$0 sps:$4 sm:$0x11]   ;;  %v944_v34 = vshll.u32 %v3047_v30, 16  ;;  %v942_v35 = vor.u32 %v941_v32, %v937_v24 }
  0x68   : > { %v1092_v40 = vrot.slane %v3051_v33, 1  ;;  %v1684_v33 = vld [vmem:[#allocation2 + $0xc] sm:$0xf] }
  0x69   : > { %v946_v37 = vrot.slane %v944_v34, 1  ;;  %1106 = vrot.lane.b32.xlu0 %v1090_v36, %s3136_s13 }
  0x6a   : > { %v1093_v42 = vsel %vm1069_vm9, %v1091_v38, %v1092_v40 }
  0x6b   : > { %v947_v41 = vsel %vm851_vm10, %v942_v35, %v946_v37 }
  0x6c   : > { %962 = vrot.lane.b32.xlu1 %v947_v41, %s3137_s14 }
  0x70   : > { %1108 = vrot.lane.b32.xlu1 %v1093_v42, %s3136_s13 }
  0xa9   : > { %v1097_v43 = vpop.permute.xlu1 %1096 }
  0xab   : > { %v951_v44 = vpop.permute.xlu0 %950 }
  0xac   : > { %974 = vst.msk [vmem:[#allocation3 + $0x8] sm:$0xff] %vm972_vm13, %v951_v44 }
  0xad   : > { %1120 = vst.msk [vmem:[#allocation3 + $0x8] sm:$0xff] %vm1118_vm14, %v1097_v43  ;;  %v1099_v45 = vpop.permute.xlu1 %1098 }
  0xaf   : > { %v953_v46 = vpop.permute.xlu0 %952 }
  0xb0   : > { %975 = vst.msk [vmem:[#allocation3 + $0x10] sm:$0xff] %vm972_vm13, %v953_v46 }
  0xb1   : > { %1121 = vst.msk [vmem:[#allocation3 + $0x10] sm:$0xff] %vm1118_vm14, %v1099_v45 }
  0xb4   : > { %v1136_v47 = vld [vmem:[#allocation3 + $0x8] sm:$0xff] }
  0xb5   : > { %2859 = vmatprep.mubr.msk.bf16.mxu0 %vm1150_vm15, %v1136_v47 }
  0xb8   : > { %v1137_v50 = vld [vmem:[#allocation3 + $0x10] sm:$0xff] }
  0xb9   : > { %2860 = vmatmul.mubr.msk.bf16.vlgmr.msra.gmra.mrb[0].mxu0 %vm1150_vm15, %v1137_v50  ;;  %v1095_v51 = vpop.permute.xlu1 %1094 }
  0xba   : > { %2872 = vmatpush3.bf16.msra.mxu0 %v1278_v48 }
  0xbb   : > { %2974 = vmatprep.subr.msk.bf16.mxu0 %vm1169_vm12, %v3059_v49  ;;  %v949_v52 = vpop.permute.xlu0 %948 }
  0xbc   : > { %973 = vst.msk [vmem:[#allocation3] sm:$0xff] %vm972_vm13, %v949_v52 }
  0xbd   : > { %1119 = vst.msk [vmem:[#allocation3] sm:$0xff] %vm1118_vm14, %v1095_v51  ;;  %v1101_v53 = vpop.permute.xlu1 %1100 }
  0xbf   : > { %v955_v54 = vpop.permute.xlu0 %954 }
  0xc0   : > { %976 = vst.msk [vmem:[#allocation3 + $0x18] sm:$0xff] %vm972_vm13, %v955_v54  ;;  %v1677_v54 = vld [vmem:[#allocation2] sm:$0xf] }
  0xc1   : > { %1122 = vst.msk [vmem:[#allocation3 + $0x18] sm:$0xff] %vm1118_vm14, %v1101_v53 }
  0xc3   : > { %v957_v39 = vpop.permute.xlu0 %956 }
  0xc4   : > { %977 = vst.msk [vmem:[#allocation3 + $0x20] sm:$0xff] %vm972_vm13, %v957_v39  ;;  %v1127_v55 = vld [vmem:[#allocation3] sm:$0xff] }
  0xc5   : > { %2873 = vmatprep.mubr.msk.bf16.mxu0 %vm1150_vm15, %v1127_v55 }
  0xc6   : > { %2874 = vmatmul.mubr.msk.bf16.vlgmr.msra.gmra.mrb[0].mxu0 %vm1150_vm15, %v1136_v47 }
  0xc7   : > { %2886 = vmatpush3.bf16.msra.mxu0 %v1395_v56  ;;  %2877 = vmatprep.mubr.msk.bf16.mxu0 %vm1150_vm15, %v1137_v50  ;;  %v1103_v57 = vpop.permute.xlu0 %1102 }
  0xc8   : > { %1123 = vst.msk [vmem:[#allocation3 + $0x20] sm:$0xff] %vm1118_vm14, %v1103_v57  ;;  %v1138_v58 = vld [vmem:[#allocation3 + $0x18] sm:$0xff]  ;;  %v959_v59 = vpop.permute.xlu1 %958 }
  0xc9   : > { %2863 = vmatprep.mubr.msk.bf16.mxu1 %vm1150_vm15, %v1138_v58  ;;  %978 = vst.msk [vmem:[#allocation3 + $0x28] sm:$0xff] %vm972_vm13, %v959_v59 }
  0xcc   : > { %v1105_v60 = vpop.permute.xlu1 %1104 }
  0xcd   : > { %1124 = vst.msk [vmem:[#allocation3 + $0x28] sm:$0xff] %vm1118_vm14, %v1105_v60  ;;  %v1688_v60 = vld [vmem:[#allocation2 + $0x14] sm:$0x1] }
  0xce   : > { %2878 = vmatmul.mubr.msk.bf16.gmra.mrb[4].mxu0 %vm1150_vm15, %v1138_v58 }
  0xcf   : > { %v1139_v61 = vld [vmem:[#allocation3 + $0x20] sm:$0xff] }
  0xd0   : > { %2864 = vmatmul.mubr.msk.bf16.vlgmr.msra.gmra.mrb[0].mxu1 %vm1150_vm15, %v1139_v61  ;;  %2881 = vmatprep.mubr.msk.bf16.mxu0 %vm1150_vm15, %v1139_v61 }
  0xd1   : > { %2900 = vmatpush3.bf16.msra.mxu1 %v2188_v6 }
  0xd4   : > { %v1140_v62 = vld [vmem:[#allocation3 + $0x28] sm:$0xff] }
  0xd5   : > { %2867 = vmatprep.mubr.msk.bf16.mxu1 %vm1150_vm15, %v1140_v62 }
  0xd6   : > { %2882 = vmatmul.mubr.msk.bf16.gmra.mrb[8].mxu0 %vm1150_vm15, %v1140_v62 }
  0xd7   : > { %2887 = vmatprep.mubr.msk.bf16.mxu0 %vm1150_vm15, %v1137_v50  ;;  %v961_v63 = vpop.permute.xlu0 %960 }
  0xd8   : > { %979 = vst.msk [vmem:[#allocation3 + $0x30] sm:$0xff] %vm972_vm13, %v961_v63 }
  0xdb   : > { %v1107_v0 = vpop.permute.xlu0 %1106 }
  0xdc   : > { %1125 = vst.msk [vmem:[#allocation3 + $0x30] sm:$0xff] %vm1118_vm14, %v1107_v0 }
  0xde   : > { %2888 = vmatmul.mubr.msk.bf16.vlgmr.msra.gmra.mrb[0].mxu0 %vm1150_vm15, %v1138_v58  ;;  %v963_v1 = vpop.permute.xlu1 %962 }
  0xdf   : > { %2891 = vmatprep.mubr.msk.bf16.mxu0 %vm1150_vm15, %v1139_v61  ;;  %980 = vst.msk [vmem:[#allocation3 + $0x38] sm:$0xff] %vm972_vm13, %v963_v1 }
  0xe2   : > { %v1109_v2 = vpop.permute.xlu1 %1108 }
  0xe3   : > { %1126 = vst.msk [vmem:[#allocation3 + $0x38] sm:$0xff] %vm1118_vm14, %v1109_v2  ;;  %v1141_v3 = vld [vmem:[#allocation3 + $0x30] sm:$0xff]  ;;  %v1681_v2 = vld [vmem:[#allocation2 + $0x8] sm:$0x1] }
  0xe4   : > { %2868 = vmatmul.mubr.msk.bf16.gmra.mrb[4].mxu1 %vm1150_vm15, %v1141_v3 }
  0xe6   : > { %2892 = vmatmul.mubr.msk.bf16.gmra.mrb[4].mxu0 %vm1150_vm15, %v1140_v62 }
  0xe7   : > { %2895 = vmatprep.mubr.msk.bf16.mxu0 %vm1150_vm15, %v1141_v3 }
  0xea   : > { %v1367_v4 = vld [vmem:[#allocation3 + $0x38] sm:$0xff] }
  0xee   : > { %2896 = vmatmul.mubr.msk.bf16.gmra.mrb[8].mxu0 %vm1150_vm15, %v1367_v4 }
 0x1a3   : > { %v2865_v7 = vpop.f32.mrb[0].mxu1 }
 0x1a4   : > { %v1223_v8 = vpop.f32.mrb[1].mxu1 }
 0x1a5   : > { %v3501_v9 = vpop.f32.mrb[2].mxu1 }
 0x1a6   : > { %v3503_v10 = vpop.f32.mrb[3].mxu1 }
 0x1b1   : > { %v2889_v13 = vpop.f32.mrb[0].mxu0 }
 0x1b2   : > { %v1499_v14 = vadd.f32 %v2889_v13, %v3508_v11  ;;  %v1431_v15 = vpop.f32.mrb[1].mxu0 }
 0x1b3   : > { %v1497_v17 = vadd.f32 %v3508_v11, %v1431_v15  ;;  %v2890_v18 = vpop.f32.mrb[2].mxu0 }
 0x1b4   : > { %v1511_v19 = vmax.f32 %v1499_v14, 0.0  ;;  %v1500_v20 = vadd.f32 %v2890_v18, %v3508_v11  ;;  %v1434_v21 = vpop.f32.mrb[3].mxu0 }
 0x1b5   : > { %v1509_v22 = vmax.f32 %v1497_v17, 0.0  ;;  %v1498_v23 = vadd.f32 %v3508_v11, %v1434_v21 }
 0x1b6   : > { %v2807_v24 = vpack.c.bf16 %v1511_v19, %v1511_v19  ;;  %v1512_v26 = vmax.f32 %v1500_v20, 0.0 }
 0x1b7   : > { %v2805_v27 = vpack.c.bf16 %v1509_v22, %v1509_v22  ;;  %v1510_v29 = vmax.f32 %v1498_v23, 0.0  ;;  %v2869_v38 = vpop.f32.mrb[4].mxu1 }
 0x1b8   : > { %v1575_v30 = vshrl.u32 %v2807_v24, 16  ;;  %v2808_v31 = vpack.c.bf16 %v1512_v26, %v1512_v26  ;;  %v1578_v32 = vshll.u32 %v2807_v24, 16  ;;  %v1239_v45 = vpop.f32.mrb[5].mxu1 }
 0x1b9   : > { %v1558_v34 = vshrl.u32 %v2805_v27, 16  ;;  %v1561_v35 = vshll.u32 %v2805_v27, 16  ;;  %v2806_v36 = vpack.c.bf16 %v1510_v29, %v1510_v29  ;;  %v2893_v37 = vpop.f32.mrb[4].mxu0  ;;  %v2870_v51 = vpop.f32.mrb[6].mxu1 }
 0x1ba   : > { %v1577_v40 = vrot.slane %v1575_v30, 7  ;;  %v1583_v41 = vshrl.u32 %v2808_v31, 16  ;;  %v1586_v42 = vshll.u32 %v2808_v31, 16  ;;  %v2931_v43 = vadd.f32 %v2893_v37, %v2865_v7  ;;  %v1447_v44 = vpop.f32.mrb[5].mxu0  ;;  %v1242_v57 = vpop.f32.mrb[7].mxu1 }
 0x1bb   : > { %v1560_v46 = vrot.slane %v1558_v34, 7  ;;  %v1566_v47 = vshrl.u32 %v2806_v36, 16  ;;  %v1569_v48 = vshll.u32 %v2806_v36, 16  ;;  %v2932_v49 = vadd.f32 %v1447_v44, %v1223_v8  ;;  %v2894_v50 = vpop.f32.mrb[6].mxu0  ;;  %v1698_v37 = vld [vmem:[#allocation2 + $0x24] sm:$0xf] }
 0x1bc   : > { %v1580_v52 = vor.u32 %v1578_v32, %v1577_v40  ;;  %v1581_v53 = vrot.slane %v1577_v40, 4  ;;  %v1585_v39 = vrot.slane %v1583_v41, 7  ;;  %v1503_v55 = vadd.f32 %v2931_v43, %v3508_v11  ;;  %v1450_v56 = vpop.f32.mrb[7].mxu0 }
 0x1bd   : > { %v1563_v58 = vor.u32 %v1561_v35, %v1560_v46  ;;  %v1564_v59 = vrot.slane %v1560_v46, 4  ;;  %v1568_v61 = vrot.slane %v1566_v47, 7  ;;  %v1501_v62 = vadd.f32 %v2932_v49, %v3508_v11  ;;  %v1691_v47 = vld [vmem:[#allocation2 + $0x18] sm:$0xf] }
 0x1be   : > { %v1685_v63 = vsel %vm3233_vm6, %v1580_v52, %v1684_v33  ;;  %v1588_v0 = vor.u32 %v1586_v42, %v1585_v39  ;;  %v1590_v1 = vrot.slane %v1585_v39, 4  ;;  %v1515_v3 = vmax.f32 %v1503_v55, 0.0 }
 0x1bf   : > { %1686 = vst [vmem:[#allocation2 + $0xc] sm:$0xf] %v1685_v63  ;;  %v1678_v4 = vsel %vm3233_vm6, %v1563_v58, %v1677_v54  ;;  %v1571_v5 = vor.u32 %v1569_v48, %v1568_v61  ;;  %v1573_v6 = vrot.slane %v1568_v61, 4  ;;  %v1513_v7 = vmax.f32 %v1501_v62, 0.0 }
 0x1c0   : > { %1679 = vst [vmem:[#allocation2] sm:$0xf] %v1678_v4  ;;  %v1589_v8 = vsel %vm3226_vm5, %v1581_v53, %v1588_v0  ;;  %v1689_v13 = vsel %vm3240_vm7, %v1590_v1, %v1688_v60  ;;  %v2811_v14 = vpack.c.bf16 %v1515_v3, %v1515_v3  ;;  %v2933_v15 = vadd.f32 %v2894_v50, %v3501_v9  ;;  %v1702_v1 = vld [vmem:[#allocation2 + $0x2c] sm:$0x1] }
 0x1c1   : > { %1687 = vst.msk [vmem:[#allocation2 + $0x10] sm:$0xf] %vm432_vm2, %v1589_v8  ;;  %1690 = vst [vmem:[#allocation2 + $0x14] sm:$0x1] %v1689_v13  ;;  %v1572_v17 = vsel %vm3226_vm5, %v1564_v59, %v1571_v5  ;;  %v1682_v18 = vsel %vm3240_vm7, %v1573_v6, %v1681_v2  ;;  %v2809_v19 = vpack.c.bf16 %v1513_v7, %v1513_v7  ;;  %v2897_v21 = vpop.f32.mrb[8].mxu0 }
 0x1c2   : > { %v2934_v20 = vadd.f32 %v1450_v56, %v3503_v10  ;;  %1680 = vst.msk [vmem:[#allocation2 + $0x4] sm:$0xf] %vm432_vm2, %v1572_v17  ;;  %1683 = vst [vmem:[#allocation2 + $0x8] sm:$0x1] %v1682_v18  ;;  %v1609_v22 = vshrl.u32 %v2811_v14, 16  ;;  %v1612_v23 = vshll.u32 %v2811_v14, 16  ;;  %v1504_v9 = vadd.f32 %v2933_v15, %v3508_v11 }
 0x1c3   : > { %v2935_v24 = vadd.f32 %v2897_v21, %v2869_v38  ;;  %v1463_v26 = vpop.f32.mrb[9].mxu0  ;;  %v1592_v27 = vshrl.u32 %v2809_v19, 16  ;;  %v1595_v29 = vshll.u32 %v2809_v19, 16  ;;  %v1695_v21 = vld [vmem:[#allocation2 + $0x20] sm:$0x1] }
 0x1c4   : > { %v1502_v30 = vadd.f32 %v2934_v20, %v3508_v11  ;;  %v2936_v31 = vadd.f32 %v1463_v26, %v1239_v45  ;;  %v2898_v32 = vpop.f32.mrb[10].mxu0  ;;  %v1611_v33 = vrot.slane %v1609_v22, 7  ;;  %v1516_v34 = vmax.f32 %v1504_v9, 0.0 }
 0x1c5   : > { %v1507_v10 = vadd.f32 %v2935_v24, %v3508_v11  ;;  %v2937_v35 = vadd.f32 %v2898_v32, %v2870_v51  ;;  %v1466_v36 = vpop.f32.mrb[11].mxu0  ;;  %v3535_v40 = vrot.slane %v1592_v27, 7 }
 0x1c6   : > { %v1514_v41 = vmax.f32 %v1502_v30, 0.0  ;;  %v1505_v42 = vadd.f32 %v2936_v31, %v3508_v11  ;;  %v2938_v38 = vadd.f32 %v1466_v36, %v1242_v57  ;;  %v1720_v43 = vld [vmem:[#allocation2 + $0xc] sm:$0x2]  ;;  %v1614_v44 = vor.u32 %v1612_v23, %v1611_v33  ;;  %v1752_v54 = vld [vmem:[#allocation2 + $0xc] sm:$0x1] }
 0x1c7   : > { %v1615_v46 = vrot.slane %v1611_v33, 4  ;;  %v2812_v48 = vpack.c.bf16 %v1516_v34, %v1516_v34  ;;  %v1519_v45 = vmax.f32 %v1507_v10, 0.0  ;;  %v2718_v49 = vrot.slane %v1720_v43, 9  ;;  %v1719_v50 = vld [vmem:[#allocation2] sm:$0x2] }
 0x1c8   : > { %v1597_v52 = vor.u32 %v1595_v29, %v3535_v40  ;;  %v1598_v51 = vrot.slane %v3535_v40, 4  ;;  %v2810_v53 = vpack.c.bf16 %v1514_v41, %v1514_v41  ;;  %v2717_v39 = vrot.slane %v1719_v50, 9  ;;  %v1768_v55 = vld [vmem:[#allocation2 + $0x10] sm:$0x8]  ;;  %v1749_v60 = vld [vmem:[#allocation2] sm:$0x1] }
 0x1c9   : > { %v1699_v56 = vsel %vm3233_vm6, %v1614_v44, %v1698_v37  ;;  %v1617_v57 = vshrl.u32 %v2812_v48, 16  ;;  %v2815_v58 = vpack.c.bf16 %v1519_v45, %v1519_v45  ;;  %v1753_v59 = vsel %vm3240_vm7, %v2718_v49, %v1752_v54  ;;  %v1767_v62 = vld [vmem:[#allocation2 + $0x4] sm:$0x8]  ;;  %v1800_v3 = vld [vmem:[#allocation2 + $0x14] sm:$0x1] }
 0x1ca   : > { %v2724_v61 = vrot.slane %v1768_v55, 11  ;;  %1700 = vst [vmem:[#allocation2 + $0x24] sm:$0xf] %v1699_v56  ;;  %v1692_v63 = vsel %vm3233_vm6, %v1597_v52, %v1691_v47  ;;  %v1620_v0 = vshll.u32 %v2812_v48, 16  ;;  %1754 = vst [vmem:[#allocation2 + $0xc] sm:$0x1] %v1753_v59  ;;  %v1750_v2 = vsel %vm3240_vm7, %v2717_v39, %v1749_v60 }
 0x1cb   : > { %v2723_v4 = vrot.slane %v1767_v62, 11  ;;  %1693 = vst [vmem:[#allocation2 + $0x18] sm:$0xf] %v1692_v63  ;;  %v1619_v5 = vrot.slane %v1617_v57, 7  ;;  %v1600_v6 = vshrl.u32 %v2810_v53, 16  ;;  %v1603_v13 = vshll.u32 %v2810_v53, 16 }
 0x1cc   : > { %1751 = vst [vmem:[#allocation2] sm:$0x1] %v1750_v2  ;;  %v1801_v7 = vsel %vm3279_vm8, %v2724_v61, %v1800_v3  ;;  %v1797_v8 = vld [vmem:[#allocation2 + $0x8] sm:$0x1]  ;;  %v1643_v14 = vshrl.u32 %v2815_v58, 16  ;;  %v1646_v15 = vshll.u32 %v2815_v58, 16  ;;  %v1508_v9 = vadd.f32 %v2937_v35, %v3508_v11 }
 0x1cd   : > { %1802 = vst [vmem:[#allocation2 + $0x14] sm:$0x1] %v1801_v7  ;;  %v1798_v17 = vsel %vm3279_vm8, %v2723_v4, %v1797_v8  ;;  %v1622_v18 = vor.u32 %v1620_v0, %v1619_v5  ;;  %v1624_v19 = vrot.slane %v1619_v5, 4  ;;  %v1602_v20 = vrot.slane %v1600_v6, 7  ;;  %v1712_v31 = vld [vmem:[#allocation2 + $0x3c] sm:$0xf] }
 0x1ce   : > { %1799 = vst [vmem:[#allocation2 + $0x8] sm:$0x1] %v1798_v17  ;;  %v3552_v22 = vrot.slane %v1643_v14, 7  ;;  %v1517_v23 = vmax.f32 %v1505_v42, 0.0  ;;  %v1506_v24 = vadd.f32 %v2938_v38, %v3508_v11  ;;  %v1520_v34 = vmax.f32 %v1508_v9, 0.0 }
 0x1cf   : > { %v1623_v26 = vsel %vm3226_vm5, %v1615_v46, %v1622_v18  ;;  %v1703_v27 = vsel %vm3240_vm7, %v1624_v19, %v1702_v1  ;;  %v1605_v29 = vor.u32 %v1603_v13, %v1602_v20  ;;  %v1607_v30 = vrot.slane %v1602_v20, 4  ;;  %v1716_v56 = vld [vmem:[#allocation2 + $0x44] sm:$0x1]  ;;  %v1709_v1 = vld [vmem:[#allocation2 + $0x38] sm:$0x1] }
 0x1d0   : > { %1701 = vst.msk [vmem:[#allocation2 + $0x28] sm:$0xf] %vm432_vm2, %v1623_v26  ;;  %1704 = vst [vmem:[#allocation2 + $0x2c] sm:$0x1] %v1703_v27  ;;  %v1648_v32 = vor.u32 %v1646_v15, %v3552_v22  ;;  %v2813_v33 = vpack.c.bf16 %v1517_v23, %v1517_v23  ;;  %v1518_v36 = vmax.f32 %v1506_v24, 0.0  ;;  %v2816_v38 = vpack.c.bf16 %v1520_v34, %v1520_v34 }
 0x1d1   : > { %v1722_v10 = vld [vmem:[#allocation2 + $0x24] sm:$0x2]  ;;  %v1606_v11 = vsel %vm3226_vm5, %v1598_v51, %v1605_v29  ;;  %v1696_v35 = vsel %vm3240_vm7, %v1607_v30, %v1695_v21  ;;  %v1758_v43 = vld [vmem:[#allocation2 + $0x24] sm:$0x1]  ;;  %v1705_v51 = vld [vmem:[#allocation2 + $0x30] sm:$0xf] }
 0x1d2   : > { %v2720_v37 = vrot.slane %v1722_v10, 9  ;;  %v1721_v40 = vld [vmem:[#allocation2 + $0x18] sm:$0x2]  ;;  %1694 = vst.msk [vmem:[#allocation2 + $0x1c] sm:$0xf] %vm432_vm2, %v1606_v11  ;;  %v1713_v41 = vsel %vm3233_vm6, %v1648_v32, %v1712_v31  ;;  %v1626_v42 = vshrl.u32 %v2813_v33, 16  ;;  %v2814_v46 = vpack.c.bf16 %v1518_v36, %v1518_v36 }
 0x1d3   : > { %1697 = vst [vmem:[#allocation2 + $0x20] sm:$0x1] %v1696_v35  ;;  %v2719_v44 = vrot.slane %v1721_v40, 9  ;;  %1714 = vst [vmem:[#allocation2 + $0x3c] sm:$0xf] %v1713_v41  ;;  %v1629_v49 = vshll.u32 %v2813_v33, 16 }
 0x1d4   : > { %v1759_v47 = vsel %vm3240_vm7, %v2720_v37, %v1758_v43  ;;  %v1755_v48 = vld [vmem:[#allocation2 + $0x18] sm:$0x1]  ;;  %v1628_v45 = vrot.slane %v1626_v42, 7  ;;  %v1651_v50 = vshrl.u32 %v2816_v38, 16  ;;  %v1634_v53 = vshrl.u32 %v2814_v46, 16 }
 0x1d5   : > { %1760 = vst [vmem:[#allocation2 + $0x24] sm:$0x1] %v1759_v47  ;;  %v1756_v52 = vsel %vm3240_vm7, %v2719_v44, %v1755_v48  ;;  %v1654_v55 = vshll.u32 %v2816_v38, 16  ;;  %v1649_v58 = vrot.slane %v3552_v22, 4  ;;  %v1637_v60 = vshll.u32 %v2814_v46, 16 }
 0x1d6   : > { %1757 = vst [vmem:[#allocation2 + $0x18] sm:$0x1] %v1756_v52  ;;  %v1631_v54 = vor.u32 %v1629_v49, %v1628_v45  ;;  %v1653_v39 = vrot.slane %v1651_v50, 7  ;;  %v1636_v59 = vrot.slane %v1634_v53, 7  ;;  %v1632_v4 = vrot.slane %v1628_v45, 4 }
 0x1d7   : > { %v1770_v57 = vld [vmem:[#allocation2 + $0x28] sm:$0x8]  ;;  %v1806_v2 = vld [vmem:[#allocation2 + $0x2c] sm:$0x1] }
 0x1d8   : > { %v2726_v61 = vrot.slane %v1770_v57, 11  ;;  %v1706_v62 = vsel %vm3233_vm6, %v1631_v54, %v1705_v51  ;;  %v1656_v63 = vor.u32 %v1654_v55, %v1653_v39  ;;  %v1658_v0 = vrot.slane %v1653_v39, 4 }
 0x1d9   : > { %v1769_v3 = vld [vmem:[#allocation2 + $0x1c] sm:$0x8]  ;;  %1707 = vst [vmem:[#allocation2 + $0x30] sm:$0xf] %v1706_v62  ;;  %v1639_v5 = vor.u32 %v1637_v60, %v1636_v59  ;;  %v1641_v6 = vrot.slane %v1636_v59, 4 }
 0x1da   : > { %v1807_v7 = vsel %vm3279_vm8, %v2726_v61, %v1806_v2  ;;  %v2725_v8 = vrot.slane %v1769_v3, 11  ;;  %v1724_v13 = vld [vmem:[#allocation2 + $0x3c] sm:$0x2]  ;;  %v1657_v14 = vsel %vm3226_vm5, %v1649_v58, %v1656_v63  ;;  %v1717_v25 = vsel %vm3240_vm7, %v1658_v0, %v1716_v56  ;;  %v1803_v15 = vld [vmem:[#allocation2 + $0x20] sm:$0x1] }
 0x1db   : > { %1808 = vst [vmem:[#allocation2 + $0x2c] sm:$0x1] %v1807_v7  ;;  %v2722_v17 = vrot.slane %v1724_v13, 9  ;;  %1715 = vst.msk [vmem:[#allocation2 + $0x40] sm:$0xf] %vm432_vm2, %v1657_v14  ;;  %v1640_v18 = vsel %vm3226_vm5, %v1632_v4, %v1639_v5  ;;  %v1710_v19 = vsel %vm3240_vm7, %v1641_v6, %v1709_v1 }
 0x1dc   : > { %1718 = vst [vmem:[#allocation2 + $0x44] sm:$0x1] %v1717_v25  ;;  %v1804_v20 = vsel %vm3279_vm8, %v2725_v8, %v1803_v15  ;;  %v1764_v21 = vld [vmem:[#allocation2 + $0x3c] sm:$0x1]  ;;  %1708 = vst.msk [vmem:[#allocation2 + $0x34] sm:$0xf] %vm432_vm2, %v1640_v18 }
 0x1dd   : > { %1711 = vst [vmem:[#allocation2 + $0x38] sm:$0x1] %v1710_v19  ;;  %1805 = vst [vmem:[#allocation2 + $0x20] sm:$0x1] %v1804_v20  ;;  %v1765_v22 = vsel %vm3240_vm7, %v2722_v17, %v1764_v21 }
 0x1de   : > { %1766 = vst [vmem:[#allocation2 + $0x3c] sm:$0x1] %v1765_v22 }
 0x1e0   : > { %v1723_v23 = vld [vmem:[#allocation2 + $0x30] sm:$0x2]  ;;  %v1761_v16 = vld [vmem:[#allocation2 + $0x30] sm:$0x1] }
 0x1e1   : > { %v2721_v9 = vrot.slane %v1723_v23, 9 }
 0x1e2   : > { %v1772_v24 = vld [vmem:[#allocation2 + $0x40] sm:$0x8] }
 0x1e3   : > { %v1762_v26 = vsel %vm3240_vm7, %v2721_v9, %v1761_v16  ;;  %v2728_v27 = vrot.slane %v1772_v24, 11  ;;  %v1771_v29 = vld [vmem:[#allocation2 + $0x34] sm:$0x8]  ;;  %v1812_v30 = vld [vmem:[#allocation2 + $0x44] sm:$0x1] }
 0x1e4   : > { %1763 = vst [vmem:[#allocation2 + $0x30] sm:$0x1] %v1762_v26  ;;  %v2727_v31 = vrot.slane %v1771_v29, 11  ;;  %v1809_v33 = vld [vmem:[#allocation2 + $0x38] sm:$0x1] }
 0x1e5   : > { %v1813_v32 = vsel %vm3279_vm8, %v2728_v27, %v1812_v30 }
 0x1e6   : > { %1814 = vst [vmem:[#allocation2 + $0x44] sm:$0x1] %v1813_v32  ;;  %v1810_v28 = vsel %vm3279_vm8, %v2727_v31, %v1809_v33 }
 0x1e7   : > { %1811 = vst [vmem:[#allocation2 + $0x38] sm:$0x1] %v1810_v28 }
 0x1ee   : > { %v3063_v12 = vld [vmem:[%s3610_s6 + $0xc] sm:$0xff]   ;;  %v3064_v34 = vld [vmem:[%s3610_s6 + $0x14] ss:$0 sps:$4 sm:$0x11]   ;;  %v3065_v10 = vld [vmem:[%s3610_s6] sm:$0xff]  }
 0x1ef   : > { %v1944_v11 = vshrl.u32 %v3063_v12, 16  ;;  %v1946_v35 = vshll.u32 %v3063_v12, 16  ;;  %v1951_v36 = vshll.u32 %v3064_v34, 16  ;;  %v3066_v37 = vld [vmem:[%s3610_s6 + $0x8] ss:$0 sps:$4 sm:$0x11]  }
 0x1f0   : > { %v1932_v40 = vshrl.u32 %v3065_v10, 16  ;;  %v1934_v41 = vshll.u32 %v3065_v10, 16  ;;  %v1939_v43 = vshll.u32 %v3066_v37, 16  ;;  %v3071_v44 = vld [vmem:[%s3610_s6 + $0x24] sm:$0xff]   ;;  %v3067_v47 = vld [vmem:[%s3610_s6 + $0xc] sm:$0xfe]  }
 0x1f1   : > { %v1948_v42 = vrot.slane %v1946_v35, 1  ;;  %v1953_v38 = vrot.slane %v1951_v36, 1  ;;  %v3068_v48 = vld [vmem:[%s3610_s6 + $0x14] ss:$0 sps:$4 sm:$0x11]   ;;  %v1968_v50 = vshrl.u32 %v3071_v44, 16 }
 0x1f2   : > { %v1936_v46 = vrot.slane %v1934_v41, 1  ;;  %v1941_v49 = vrot.slane %v1939_v43, 1  ;;  %v2096_v51 = vrot.slane %v3067_v47, 1  ;;  %v2097_v53 = vrot.slane %v3068_v48, 1  ;;  %v3069_v54 = vld [vmem:[%s3610_s6] sm:$0xfe]  }
 0x1f3   : > { %v1949_v45 = vor.u32 %v1948_v42, %v1944_v11  ;;  %v3070_v55 = vld [vmem:[%s3610_s6 + $0x8] ss:$0 sps:$4 sm:$0x11]   ;;  %v1970_v56 = vshll.u32 %v3071_v44, 16  ;;  %v2093_v58 = vrot.slane %v3069_v54, 1  ;;  %v3073_v59 = vld [vmem:[%s3610_s6 + $0x18] sm:$0xff]  }
 0x1f4   : > { %v1937_v52 = vor.u32 %v1936_v46, %v1932_v40  ;;  %v2094_v60 = vrot.slane %v3070_v55, 1  ;;  %v3072_v61 = vld [vmem:[%s3610_s6 + $0x2c] ss:$0 sps:$4 sm:$0x11]   ;;  %v3081_v63 = vld [vmem:[%s3629_s7] sm:$0xff]   ;;  %v2098_v0 = vsel %vm1069_vm9, %v2096_v51, %v2097_v53  ;;  %v1956_v4 = vshrl.u32 %v3073_v59, 16 }
 0x1f5   : > { %v1954_v39 = vsel %vm851_vm10, %v1949_v45, %v1953_v38  ;;  %v1972_v62 = vrot.slane %v1970_v56, 1  ;;  %v1975_v2 = vshll.u32 %v3072_v61, 16  ;;  %v3074_v3 = vld [vmem:[%s3610_s6 + $0x20] ss:$0 sps:$4 sm:$0x11]   ;;  %v1958_v6 = vshll.u32 %v3073_v59, 16 }
 0x1f6   : > { %1981 = vrot.lane.b32.xlu1 %v1954_v39, %s3137_s14  ;;  %v1942_v57 = vsel %vm851_vm10, %v1937_v52, %v1941_v49  ;;  %v2095_v5 = vsel %vm1069_vm9, %v2093_v58, %v2094_v60  ;;  %v2007_v7 = vshrl.u32 %v3081_v63, 16  ;;  %v1963_v13 = vshll.u32 %v3074_v3, 16  ;;  %v3075_v14 = vld [vmem:[%s3610_s6 + $0x24] sm:$0xfe]   ;;  %v3077_v22 = vld [vmem:[%s3610_s6 + $0x18] sm:$0xfe]  }
 0x1f7   : > { %1979 = vrot.lane.b32.xlu0 %v1942_v57, %s3137_s14  ;;  %v1973_v1 = vor.u32 %v1972_v62, %v1968_v50  ;;  %v1977_v8 = vrot.slane %v1975_v2, 1  ;;  %v1960_v25 = vrot.slane %v1958_v6, 1  ;;  %v3076_v15 = vld [vmem:[%s3610_s6 + $0x2c] ss:$0 sps:$4 sm:$0x11]   ;;  %v2102_v19 = vrot.slane %v3075_v14, 1 }
 0x1f8   : > { %v1965_v18 = vrot.slane %v1963_v13, 1  ;;  %v2103_v21 = vrot.slane %v3076_v15, 1  ;;  %v3078_v23 = vld [vmem:[%s3610_s6 + $0x20] ss:$0 sps:$4 sm:$0x11]   ;;  %v2099_v24 = vrot.slane %v3077_v22, 1 }
 0x1f9   : > { %v1978_v17 = vsel %vm851_vm10, %v1973_v1, %v1977_v8  ;;  %v1961_v20 = vor.u32 %v1960_v25, %v1956_v4  ;;  %v3085_v9 = vld [vmem:[%s3645_s8] sm:$0xff]   ;;  %v2100_v26 = vrot.slane %v3078_v23, 1  ;;  %v3080_v30 = vld [vmem:[%s3629_s7 + $0x8] ss:$0 sps:$4 sm:$0x11]   ;;  %v2009_v31 = vshll.u32 %v3081_v63, 16 }
 0x1fa   : > { %2107 = vrot.lane.b32.xlu1 %v2098_v0, %s3136_s13  ;;  %v3079_v27 = vld [vmem:[%s3629_s7] sm:$0xfe]   ;;  %v2104_v29 = vsel %vm1069_vm9, %v2102_v19, %v2103_v21  ;;  %v3082_v33 = vld [vmem:[%s3629_s7 + $0x8] ss:$0 sps:$4 sm:$0x11]   ;;  %v2133_v28 = vrot.slane %v3080_v30, 1 }
 0x1fb   : > { %2105 = vrot.lane.b32.xlu0 %v2095_v5, %s3136_s13  ;;  %v1966_v16 = vsel %vm851_vm10, %v1961_v20, %v1965_v18  ;;  %v2132_v32 = vrot.slane %v3079_v27, 1  ;;  %v2011_v12 = vrot.slane %v2009_v31, 1  ;;  %v2101_v34 = vsel %vm1069_vm9, %v2099_v24, %v2100_v26  ;;  %v3083_v11 = vld [vmem:[%s3645_s8] sm:$0xfe]   ;;  %v3088_v47 = vld [vmem:[%s3610_s6 + $0xc] sm:$0xff]   ;;  %v3091_v54 = vld [vmem:[%s3610_s6 + $0x18] sm:$0xff]  }
 0x1fc   : > { %v2014_v10 = vshll.u32 %v3082_v33, 16  ;;  %v2034_v35 = vshrl.u32 %v3085_v9, 16  ;;  %v3084_v40 = vld [vmem:[%s3645_s8 + $0x8] ss:$0 sps:$4 sm:$0x11]   ;;  %v2036_v41 = vshll.u32 %v3085_v9, 16 }
 0x1fd   : > { %v2134_v36 = vsel %vm1069_vm9, %v2132_v32, %v2133_v28  ;;  %v2012_v37 = vor.u32 %v2011_v12, %v2007_v7  ;;  %v2150_v38 = vrot.slane %v3083_v11, 1  ;;  %v2151_v43 = vrot.slane %v3084_v40, 1  ;;  %v3086_v44 = vld [vmem:[%s3645_s8 + $0x8] ss:$0 sps:$4 sm:$0x11]   ;;  %1859 = vst.msk [vmem:[#allocation3 + $0x10] sm:$0xff] %vm754_vm11, %v3088_v47 }
 0x1fe   : > { %1985 = vrot.lane.b32.xlu1 %v1978_v17, %s3137_s14  ;;  %v2016_v42 = vrot.slane %v2014_v10, 1  ;;  %v2038_v46 = vrot.slane %v2036_v41, 1  ;;  %v2041_v50 = vshll.u32 %v3086_v44, 16  ;;  %v3089_v52 = vld [vmem:[%s3610_s6] sm:$0xff]   ;;  %1860 = vst.msk [vmem:[#allocation3 + $0x18] sm:$0xff] %vm754_vm11, %v3091_v54  ;;  %v2459_v21 = vld [vmem:[%s3719_s26 + $0x10] sm:$0xff] }
 0x1ff   : > { %1983 = vrot.lane.b32.xlu0 %v1966_v16, %s3137_s14  ;;  %v2152_v45 = vsel %vm1069_vm9, %v2150_v38, %v2151_v43  ;;  %v3090_v51 = vld [vmem:[%s3610_s6 + $0x24] sm:$0xff]   ;;  %1858 = vst.msk [vmem:[#allocation3 + $0x8] sm:$0xff] %vm754_vm11, %v3089_v52  ;;  %v3095_v4 = vld [vmem:[%s3771_s3 + $0x10] sm:$0x3f]   ;;  %v2782_v19 = vld [vmem:[%s3772_s4] ss:$0 sm:$0xff] }
 0x200   : > { %v2017_v48 = vsel %vm851_vm10, %v2012_v37, %v2016_v42  ;;  %v2039_v49 = vor.u32 %v2038_v46, %v2034_v35  ;;  %v2043_v53 = vrot.slane %v2041_v50, 1  ;;  %v3092_v39 = vld [vmem:[%s3771_s3] sm:$0x3f]   ;;  %1861 = vst.msk [vmem:[#allocation3 + $0x20] sm:$0xff] %vm754_vm11, %v3090_v51  ;;  %v2365_v17 = vsel %vm1169_vm12, %v3095_v4, 0  ;;  %v2460_v26 = vld [vmem:[%s3719_s26 + $0x18] sm:$0xff] }
 0x201   : > { %v3093_v55 = vld [vmem:[%s3629_s7] sm:$0xff]   ;;  %2976 = vmatprep.subr.msk.bf16.mxu1 %vm1169_vm12, %v3092_v39  ;;  %v2273_v3 = vsel %vm1169_vm12, %v3092_v39, 0  ;;  %v2458_v31 = vld [vmem:[%s3719_s26 + $0x8] sm:$0xff]  ;;  %v2463_v10 = vld [vmem:[%s3719_s26 + $0x30] sm:$0xff] }
 0x202   : > { %2111 = vrot.lane.b32.xlu1 %v2104_v29, %s3136_s13  ;;  %v2044_v56 = vsel %vm851_vm10, %v2039_v49, %v2043_v53  ;;  %v3094_v57 = vld [vmem:[%s3645_s8] sm:$0xff]   ;;  %1873 = vst.msk [vmem:[#allocation3] sm:$0xff] %vm754_vm11, %v3093_v55  ;;  %v2464_v41 = vld [vmem:[%s3719_s26 + $0x38] sm:$0xff]  ;;  %v2462_v44 = vld [vmem:[%s3719_s26 + $0x28] sm:$0xff] }
 0x203   : > { %2109 = vrot.lane.b32.xlu0 %v2101_v34, %s3136_s13  ;;  %1886 = vst.msk [vmem:[#allocation3 + $0x28] sm:$0xff] %vm754_vm11, %v3094_v57  ;;  %v2457_v9 = vld [vmem:[%s3719_s26] sm:$0xff] }
 0x206   : > { %2135 = vrot.lane.b32.xlu1 %v2134_v36, %s3136_s13  ;;  %v2461_v36 = vld [vmem:[%s3719_s26 + $0x20] sm:$0xff] }
 0x207   : > { %2018 = vrot.lane.b32.xlu0 %v2017_v48, %s3137_s14 }
 0x20a   : > { %2153 = vrot.lane.b32.xlu1 %v2152_v45, %s3136_s13 }
 0x20b   : > { %2045 = vrot.lane.b32.xlu0 %v2044_v56, %s3137_s14 }
 0x268   : > { %v1982_v58 = vpop.permute.xlu1 %1981 }
 0x269   : > { %1992 = vst.msk [vmem:[#allocation3 + $0x10] sm:$0xff] %vm972_vm13, %v1982_v58  ;;  %v1980_v59 = vpop.permute.xlu0 %1979 }
 0x26a   : > { %1991 = vst.msk [vmem:[#allocation3 + $0x8] sm:$0xff] %vm972_vm13, %v1980_v59 }
 0x26c   : > { %v2108_v60 = vpop.permute.xlu1 %2107 }
 0x26d   : > { %2118 = vst.msk [vmem:[#allocation3 + $0x10] sm:$0xff] %vm1118_vm14, %v2108_v60  ;;  %v2106_v61 = vpop.permute.xlu0 %2105 }
 0x26e   : > { %2117 = vst.msk [vmem:[#allocation3 + $0x8] sm:$0xff] %vm1118_vm14, %v2106_v61 }
 0x270   : > { %v1986_v62 = vpop.permute.xlu1 %1985 }
 0x271   : > { %1994 = vst.msk [vmem:[#allocation3 + $0x20] sm:$0xff] %vm972_vm13, %v1986_v62  ;;  %v1984_v63 = vpop.permute.xlu0 %1983 }
 0x272   : > { %1993 = vst.msk [vmem:[#allocation3 + $0x18] sm:$0xff] %vm972_vm13, %v1984_v63 }
 0x274   : > { %v2112_v0 = vpop.permute.xlu1 %2111  ;;  %v2164_v1 = vld [vmem:[#allocation3 + $0x10] sm:$0xff] }
 0x275   : > { %2120 = vst.msk [vmem:[#allocation3 + $0x20] sm:$0xff] %vm1118_vm14, %v2112_v0  ;;  %v2163_v2 = vld [vmem:[#allocation3 + $0x8] sm:$0xff]  ;;  %v2110_v5 = vpop.permute.xlu0 %2109 }
 0x276   : > { %2901 = vmatprep.mubr.msk.bf16.mxu1 %vm1150_vm15, %v2163_v2  ;;  %2119 = vst.msk [vmem:[#allocation3 + $0x18] sm:$0xff] %vm1118_vm14, %v2110_v5 }
 0x277   : > { %2902 = vmatmul.mubr.msk.bf16.vlgmr.msra.gmra.mrb[8].mxu1 %vm1150_vm15, %v2164_v1 }
 0x278   : > { %2910 = vmatpush3.bf16.msra.mxu1 %v2273_v3  ;;  %v2136_v6 = vpop.permute.xlu1 %2135 }
 0x279   : > { %2977 = vmatprep.subr.msk.bf16.mxu1 %vm1169_vm12, %v3095_v4  ;;  %v2019_v7 = vpop.permute.xlu0 %2018 }
 0x27a   : > { %2021 = vst.msk [vmem:[#allocation3] sm:$0xff] %vm972_vm13, %v2019_v7 }
 0x27b   : > { %2138 = vst.msk [vmem:[#allocation3] sm:$0xff] %vm1118_vm14, %v2136_v6 }
 0x27c   : > { %v2166_v8 = vld [vmem:[#allocation3 + $0x20] sm:$0xff]  ;;  %v2154_v13 = vpop.permute.xlu1 %2153 }
 0x27d   : > { %v2165_v14 = vld [vmem:[#allocation3 + $0x18] sm:$0xff]  ;;  %v2046_v25 = vpop.permute.xlu0 %2045 }
 0x27e   : > { %2905 = vmatprep.mubr.msk.bf16.mxu1 %vm1150_vm15, %v2165_v14  ;;  %2048 = vst.msk [vmem:[#allocation3 + $0x28] sm:$0xff] %vm972_vm13, %v2046_v25 }
 0x27f   : > { %2906 = vmatmul.mubr.msk.bf16.gmra.mrb[12].mxu1 %vm1150_vm15, %v2166_v8  ;;  %2156 = vst.msk [vmem:[#allocation3 + $0x28] sm:$0xff] %vm1118_vm14, %v2154_v13 }
 0x282   : > { %v2157_v15 = vld [vmem:[#allocation3] sm:$0xff] }
 0x283   : > { %2911 = vmatprep.mubr.msk.bf16.mxu1 %vm1150_vm15, %v2157_v15 }
 0x286   : > { %v2343_v18 = vld [vmem:[#allocation3 + $0x28] sm:$0xff] }
 0x287   : > { %2912 = vmatmul.mubr.msk.bf16.vlgmr.msra.gmra.mrb[8].mxu1 %vm1150_vm15, %v2163_v2 }
 0x288   : > { %2920 = vmatpush3.bf16.msra.mxu1 %v2365_v17  ;;  %2915 = vmatprep.mubr.msk.bf16.mxu1 %vm1150_vm15, %v2164_v1 }
 0x28f   : > { %2916 = vmatmul.mubr.msk.bf16.gmra.mrb[12].mxu1 %vm1150_vm15, %v2165_v14 }
 0x290   : > { %2921 = vmatprep.mubr.msk.bf16.mxu1 %vm1150_vm15, %v2164_v1 }
 0x297   : > { %2922 = vmatmul.mubr.msk.bf16.vlgmr.msra.gmra.mrb[8].mxu1 %vm1150_vm15, %v2165_v14 }
 0x298   : > { %2925 = vmatprep.mubr.msk.bf16.mxu1 %vm1150_vm15, %v2166_v8 }
 0x29f   : > { %2926 = vmatmul.mubr.msk.bf16.gmra.mrb[12].mxu1 %vm1150_vm15, %v2343_v18 }
 0x36a   : > { %v2923_v20 = vpop.f32.mrb[8].mxu1 }
 0x36b   : > { %v2449_v22 = vadd.f32 %v2923_v20, %v2782_v19  ;;  %v2401_v23 = vpop.f32.mrb[9].mxu1 }
 0x36c   : > { %v2447_v16 = vadd.f32 %v2782_v19, %v2401_v23  ;;  %v2924_v24 = vpop.f32.mrb[10].mxu1 }
 0x36d   : > { %v2467_v27 = vadd.f32 %v2459_v21, %v2449_v22  ;;  %v2450_v29 = vadd.f32 %v2924_v24, %v2782_v19  ;;  %v2404_v30 = vpop.f32.mrb[11].mxu1 }
 0x36e   : > { %v2465_v32 = vadd.f32 %v2457_v9, %v2447_v16  ;;  %v2448_v33 = vadd.f32 %v2782_v19, %v2404_v30 }
 0x36f   : > { %2475 = vst.msk [vmem:[%s3729_s18 + $0x10] sm:$0xff] %vm754_vm11, %v2467_v27  ;;  %v2468_v28 = vadd.f32 %v2460_v26, %v2450_v29 }
 0x370   : > { %2473 = vst.msk [vmem:[%s3729_s18] sm:$0xff] %vm754_vm11, %v2465_v32  ;;  %v2466_v12 = vadd.f32 %v2458_v31, %v2448_v33 }
 0x371   : > { %2476 = vst.msk [vmem:[%s3729_s18 + $0x18] sm:$0xff] %vm754_vm11, %v2468_v28 }
 0x372   : > { %2474 = vst.msk [vmem:[%s3729_s18 + $0x8] sm:$0xff] %vm754_vm11, %v2466_v12  ;;  %v2927_v34 = vpop.f32.mrb[12].mxu1 }
 0x373   : > { %v2453_v11 = vadd.f32 %v2927_v34, %v2782_v19  ;;  %v2417_v35 = vpop.f32.mrb[13].mxu1 }
 0x374   : > { %v2451_v37 = vadd.f32 %v2782_v19, %v2417_v35  ;;  %v2928_v40 = vpop.f32.mrb[14].mxu1 }
 0x375   : > { %v2471_v42 = vadd.f32 %v2463_v10, %v2453_v11  ;;  %v2454_v38 = vadd.f32 %v2928_v40, %v2782_v19  ;;  %v2420_v43 = vpop.f32.mrb[15].mxu1 }
 0x376   : > { %v2469_v46 = vadd.f32 %v2461_v36, %v2451_v37  ;;  %v2452_v47 = vadd.f32 %v2782_v19, %v2420_v43 }
 0x377   : > { %2479 = vst.msk [vmem:[%s3729_s18 + $0x30] sm:$0xff] %vm754_vm11, %v2471_v42  ;;  %v2472_v48 = vadd.f32 %v2464_v41, %v2454_v38 }
 0x378   : > { %2477 = vst.msk [vmem:[%s3729_s18 + $0x20] sm:$0xff] %vm754_vm11, %v2469_v46  ;;  %v2470_v45 = vadd.f32 %v2462_v44, %v2452_v47 }
 0x379   : > { %2480 = vst.msk [vmem:[%s3729_s18 + $0x38] sm:$0xff] %vm754_vm11, %v2472_v48 }
 0x37a   : > { %2478 = vst.msk [vmem:[%s3729_s18 + $0x28] sm:$0xff] %vm754_vm11, %v2470_v45 }
 0x37b PF: > { %s15_s22 = sadd.s32 1, %s3134_s22   ;;  %s3783_s18 = smov %s3126_s20 }
 0x37c   : > { %p12_p13 = scmp.ge.s32.totalorder %s15_s22, 10   ;;  %s3784_s19 = smov %s3130_s21 }
 0x37d   : > { %s3785_s20 = smov %s3788_s23  ;;  %s3786_s21 = smov %s3792_s24 }
 0x37e   :  { %14 = sbr.rel (!%p12_p13) target bundleno = 3 (0x3), region = 86 }

</bundles_post_ra>
